<compile_context>
chip_gen: v6e
topology: v6e:2x2x1
jax: 0.10.0
libtpu: 0.0.40
codegen_flags: <defaults>
</compile_context>

<pallas_src>
import math

import numpy as np

import jax
import jax.numpy as jnp
from jax.experimental import pallas as pl
from jax.experimental.pallas import tpu as pltpu


def _make_cglu_kernel(hid, img_w, tile_m):
    """Kernel factory for fixed hidden width, image width and M-tile size."""

    def kernel(x_ref, w1_ref, b1_ref, dww_ref, dwb_ref, w2_ref, b2_ref,
               mask_ref, o_ref):
        # x_ref: (Cin, tile_m) — channels on sublanes, flattened (img, h, w)
        # positions on lanes; every tile holds whole images.

        # ---- fc1: one MXU pass, (2*hid, Cin) @ (Cin, tile_m), f32 acc ------
        h = jnp.dot(w1_ref[...], x_ref[...],
                    preferred_element_type=jnp.float32) + b1_ref[...]
        xg = h[:hid, :]            # gate branch  (hid, tile_m) — free sublane slice
        v = h[hid:, :]             # value branch (hid, tile_m)

        # ---- boundary masks (position-only, grid-invariant) -----------------
        # Hoisted broadcasts (broadcast_in_dim is not CSE'd by JAX).
        m_up = jnp.broadcast_to(mask_ref[0:1, :], (hid, tile_m))
        m_down = jnp.broadcast_to(mask_ref[1:2, :], (hid, tile_m))
        m_left = jnp.broadcast_to(mask_ref[2:3, :], (hid, tile_m))
        m_right = jnp.broadcast_to(mask_ref[3:4, :], (hid, tile_m))

        def rolled(a, s):
            # out[j] = a[j - s]  (wrapped lanes always land on masked positions)
            return pltpu.roll(a, s % tile_m, axis=1)

        # ---- 3x3 depthwise conv: XLU lane rolls + mask multiplies -----------
        # dww_ref[t] is the per-channel tap (hid, 1), t = 3*kh + kw.
        # Center tap initialises the accumulator (no zeros pass).
        acc = xg * dww_ref[4]
        # Same-row neighbours.
        acc = acc + rolled(xg, 1) * m_left * dww_ref[3]     # xg[h, w-1]
        acc = acc + rolled(xg, -1) * m_right * dww_ref[5]   # xg[h, w+1]
        # Row above (dh = -1): h-mask applied once, corners reuse it.
        up = rolled(xg, img_w) * m_up                       # xg[h-1, w]
        acc = acc + up * dww_ref[1]
        acc = acc + rolled(up, 1) * m_left * dww_ref[0]     # xg[h-1, w-1]
        acc = acc + rolled(up, -1) * m_right * dww_ref[2]   # xg[h-1, w+1]
        # Row below (dh = +1).
        down = rolled(xg, -img_w) * m_down                  # xg[h+1, w]
        acc = acc + down * dww_ref[7]
        acc = acc + rolled(down, 1) * m_left * dww_ref[6]   # xg[h+1, w-1]
        acc = acc + rolled(down, -1) * m_right * dww_ref[8] # xg[h+1, w+1]
        acc = acc + dwb_ref[...]                            # conv bias

        # ---- SiLU gate (EUP sigmoid) * value branch --------------------------
        # (For bf16 models on v6e/v7x, cast `gated` to bf16 here before fc2.)
        gated = acc * jax.nn.sigmoid(acc) * v

        # ---- fc2: (Cout, hid) @ (hid, tile_m), lane-dense unmasked store ----
        out = jnp.dot(w2_ref[...], gated,
                      preferred_element_type=jnp.float32) + b2_ref[...]
        o_ref[...] = out.astype(o_ref.dtype)

    return kernel


def _choose_imgs_per_tile(B, HW, target_rows, min_grid):
    """Images per M-tile: divides B, lane dim multiple of 128, near target,
    and (when possible) leaves >= min_grid grid steps for megacore sharding."""
    unit = 128 // math.gcd(HW, 128)          # images/tile must be a multiple of this
    cands = [n for n in range(1, B + 1) if B % n == 0 and n % unit == 0]
    if not cands:
        # No tile satisfies the lane rule -> single full-M tile (lane dim ==
        # full extent is always legal).  Acceptable for small problems.
        return B
    multi = [n for n in cands if B // n >= min_grid]
    pool = multi if multi else cands
    under = [n for n in pool if n * HW <= target_rows]
    return max(under) if under else min(pool)


def conv_glu(x, w1, b1, dw_w, dwb, w2, b2, *, target_tile_rows=2048, min_grid=2):
    """ConvolutionalGLU forward, NHWC activations, torch-native weight layouts:
       w1:   (2*hid, Cin)    fc1.weight          b1:  (2*hid,)
       dw_w: (hid, 1, 3, 3)  dwconv weight       dwb: (hid,)
       w2:   (Cout, hid)     fc2.weight          b2:  (Cout,)
    """
    B, H, W, Cin = x.shape
    hid = dwb.shape[0]
    two_hid = w1.shape[0]
    Cout = w2.shape[0]
    assert two_hid == 2 * hid
    HW = H * W
    M = B * HW

    # ---- tile selection: whole images per tile (conv needs no halo), lane dim
    # a multiple of 128, grid >= min_grid when possible (both v7x TCs busy).
    imgs_per_tile = _choose_imgs_per_tile(B, HW, target_tile_rows, min_grid)
    tile_m = imgs_per_tile * HW
    assert M % tile_m == 0 and tile_m % HW == 0      # masks rely on whole images
    assert tile_m == M or tile_m % 128 == 0
    grid = (M // tile_m,)

    # ---- host-side layout plumbing (channels -> sublanes, positions -> lanes)
    x_t = jnp.transpose(x, (3, 0, 1, 2)).reshape(Cin, M)
    b1_c = b1.reshape(two_hid, 1)
    # dww[t, c, 0] == dw_w[c, 0, kh, kw] with t = 3*kh + kw
    dww = jnp.transpose(dw_w.reshape(hid, 9), (1, 0)).reshape(9, hid, 1)
    dwb_c = dwb.reshape(hid, 1)
    b2_c = b2.reshape(Cout, 1)

    # Position-only boundary masks along the lane axis — identical for every
    # tile (whole-image invariant), so the block is grid-invariant.
    j = np.arange(tile_m)
    hh = (j // W) % H
    ww = j % W
    masks = np.zeros((8, tile_m), np.float32)        # rows 4..7 are padding
    masks[0] = (hh >= 1).astype(np.float32)          # up    (dh = -1)
    masks[1] = (hh <= H - 2).astype(np.float32)      # down  (dh = +1)
    masks[2] = (ww >= 1).astype(np.float32)          # left  (dw = -1)
    masks[3] = (ww <= W - 2).astype(np.float32)      # right (dw = +1)
    masks = jnp.asarray(masks)

    kernel = _make_cglu_kernel(hid, W, tile_m)

    grid_spec = pltpu.PrefetchScalarGridSpec(
        num_scalar_prefetch=0,
        grid=grid,
        in_specs=[
            pl.BlockSpec((Cin, tile_m), lambda i: (0, i)),
            pl.BlockSpec((two_hid, Cin), lambda i: (0, 0)),
            pl.BlockSpec((two_hid, 1), lambda i: (0, 0)),
            pl.BlockSpec((9, hid, 1), lambda i: (0, 0, 0)),
            pl.BlockSpec((hid, 1), lambda i: (0, 0)),
            pl.BlockSpec((Cout, hid), lambda i: (0, 0)),
            pl.BlockSpec((Cout, 1), lambda i: (0, 0)),
            pl.BlockSpec((8, tile_m), lambda i: (0, 0)),
        ],
        out_specs=pl.BlockSpec((Cout, tile_m), lambda i: (0, i)),
    )

    out_t = pl.pallas_call(
        kernel,
        out_shape=jax.ShapeDtypeStruct((Cout, M), x.dtype),
        grid_spec=grid_spec,
        compiler_params=pltpu.CompilerParams(
            dimension_semantics=("parallel",),
        ),
    )(x_t, w1, b1_c, dww, dwb_c, w2, b2_c, masks)

    return jnp.transpose(out_t.reshape(Cout, B, H, W), (1, 2, 3, 0))


def conv_glu_reference(x, w1, b1, dw_w, dwb, w2, b2):
    """Plain-JAX reference (NHWC), mirrors the PyTorch forward exactly."""
    B, H, W, Cin = x.shape
    hid = dwb.shape[0]
    h = x @ w1.T + b1
    xg, v = h[..., :hid], h[..., hid:]
    xp = jnp.pad(xg, ((0, 0), (1, 1), (1, 1), (0, 0)))
    acc = jnp.zeros_like(xg)
    for kh in range(3):
        for kw in range(3):
            acc = acc + xp[:, kh:kh + H, kw:kw + W, :] * dw_w[:, 0, kh, kw]
    acc = acc + dwb
    gated = jax.nn.silu(acc) * v
    return gated @ w2.T + b2


if __name__ == "__main__":
    # ConvolutionalGLU(in_features=16, mlp_ratio=2): hidden=32, out=16.
    B, H, W = 4, 16, 16
    Cin = 16
    mlp_ratio = 2
    hid = int(mlp_ratio * Cin)   # 32
    Cout = Cin                   # out_features defaults to in_features

    key = jax.random.PRNGKey(0)
    kx, k1, kb1, kdw, kdb, k2, kb2 = jax.random.split(key, 7)

    x = jax.random.normal(kx, (B, H, W, Cin), jnp.float32)
    # fc1: torch weight layout (2*hid, Cin)
    w1 = 0.1 * jax.random.normal(k1, (2 * hid, Cin), jnp.float32)
    b1 = 0.1 * jax.random.normal(kb1, (2 * hid,), jnp.float32)
    # dwconv: torch weight layout (hid, 1, 3, 3)
    dw_w = 0.1 * jax.random.normal(kdw, (hid, 1, 3, 3), jnp.float32)
    dwb = 0.1 * jax.random.normal(kdb, (hid,), jnp.float32)
    # fc2: torch weight layout (Cout, hid)
    w2 = 0.1 * jax.random.normal(k2, (Cout, hid), jnp.float32)
    b2 = 0.1 * jax.random.normal(kb2, (Cout,), jnp.float32)

    out = jax.block_until_ready(conv_glu(x, w1, b1, dw_w, dwb, w2, b2))
    ref = jax.block_until_ready(conv_glu_reference(x, w1, b1, dw_w, dwb, w2, b2))

    max_err = float(jnp.max(jnp.abs(out - ref)))
    assert out.shape == (B, H, W, Cout), out.shape
    assert max_err < 1e-4, f"mismatch vs reference: {max_err}"
    print("KERNEL_OK")
</pallas_src>

<mosaic_0001>
module attributes {stable_mosaic.version = 11 : i64} {
  func.func @kernel(%arg0: i32, %arg1: memref<16x512xf32, #tpu.memory_space<vmem>>, %arg2: memref<64x16xf32, #tpu.memory_space<vmem>>, %arg3: memref<64x1xf32, #tpu.memory_space<vmem>>, %arg4: memref<9x32x1xf32, #tpu.memory_space<vmem>>, %arg5: memref<32x1xf32, #tpu.memory_space<vmem>>, %arg6: memref<16x32xf32, #tpu.memory_space<vmem>>, %arg7: memref<16x1xf32, #tpu.memory_space<vmem>>, %arg8: memref<8x512xf32, #tpu.memory_space<vmem>>, %arg9: memref<16x512xf32, #tpu.memory_space<vmem>>) attributes {dimension_semantics = [#tpu.dimension_semantics<parallel>], iteration_bounds = array<i64: 2>, scalar_prefetch = 0 : i64, scratch_operands = 0 : i64, tpu.core_type = #tpu.core_type<tc>, window_params = [{transform_indices = @transform_0, window_bounds = array<i64: 16, 512>}, {pipeline_mode = #tpu.pipeline_mode<synchronous>, transform_indices = @transform_1, window_bounds = array<i64: 64, 16>}, {pipeline_mode = #tpu.pipeline_mode<synchronous>, transform_indices = @transform_2, window_bounds = array<i64: 64, 1>}, {pipeline_mode = #tpu.pipeline_mode<synchronous>, transform_indices = @transform_3, window_bounds = array<i64: 9, 32, 1>}, {pipeline_mode = #tpu.pipeline_mode<synchronous>, transform_indices = @transform_4, window_bounds = array<i64: 32, 1>}, {pipeline_mode = #tpu.pipeline_mode<synchronous>, transform_indices = @transform_5, window_bounds = array<i64: 16, 32>}, {pipeline_mode = #tpu.pipeline_mode<synchronous>, transform_indices = @transform_6, window_bounds = array<i64: 16, 1>}, {pipeline_mode = #tpu.pipeline_mode<synchronous>, transform_indices = @transform_7, window_bounds = array<i64: 8, 512>}, {transform_indices = @transform_8, window_bounds = array<i64: 16, 512>}]} {
    %c0 = arith.constant 0 : index
    %c0_0 = arith.constant 0 : index
    %0 = vector.load %arg2[%c0, %c0_0] : memref<64x16xf32, #tpu.memory_space<vmem>>, vector<64x16xf32>
    %c0_1 = arith.constant 0 : index
    %c0_2 = arith.constant 0 : index
    %1 = vector.load %arg1[%c0_1, %c0_2] : memref<16x512xf32, #tpu.memory_space<vmem>>, vector<16x512xf32>
    %cst = arith.constant dense<0.000000e+00> : vector<64x512xf32>
    %2 = tpu.matmul %0, %1, %cst {dimension_numbers = #tpu.dot_dimension_numbers<[1], [0], [0], [1], [0, 0, 1, 1], [], []>} : vector<64x16xf32>, vector<16x512xf32>, vector<64x512xf32> -> vector<64x512xf32>
    %c0_3 = arith.constant 0 : index
    %c0_4 = arith.constant 0 : index
    %3 = vector.load %arg3[%c0_3, %c0_4] : memref<64x1xf32, #tpu.memory_space<vmem>>, vector<64x1xf32>
    %4 = vector.broadcast %3 : vector<64x1xf32> to vector<64x512xf32>
    %5 = arith.addf %2, %4 : vector<64x512xf32>
    %6 = vector.extract_strided_slice %5 {offsets = [0, 0], sizes = [32, 512], strides = [1, 1]} : vector<64x512xf32> to vector<32x512xf32>
    %7 = vector.extract_strided_slice %5 {offsets = [32, 0], sizes = [32, 512], strides = [1, 1]} : vector<64x512xf32> to vector<32x512xf32>
    %c0_5 = arith.constant 0 : index
    %c0_6 = arith.constant 0 : index
    %8 = vector.load %arg8[%c0_5, %c0_6] : memref<8x512xf32, #tpu.memory_space<vmem>>, vector<1x512xf32>
    %9 = vector.shape_cast %8 : vector<1x512xf32> to vector<1x512xf32>
    %10 = vector.broadcast %9 : vector<1x512xf32> to vector<32x512xf32>
    %c1 = arith.constant 1 : index
    %c0_7 = arith.constant 0 : index
    %11 = vector.load %arg8[%c1, %c0_7] : memref<8x512xf32, #tpu.memory_space<vmem>>, vector<1x512xf32>
    %12 = vector.shape_cast %11 : vector<1x512xf32> to vector<1x512xf32>
    %13 = vector.broadcast %12 : vector<1x512xf32> to vector<32x512xf32>
    %c2 = arith.constant 2 : index
    %c0_8 = arith.constant 0 : index
    %14 = vector.load %arg8[%c2, %c0_8] : memref<8x512xf32, #tpu.memory_space<vmem>>, vector<1x512xf32>
    %15 = vector.shape_cast %14 : vector<1x512xf32> to vector<1x512xf32>
    %16 = vector.broadcast %15 : vector<1x512xf32> to vector<32x512xf32>
    %c3 = arith.constant 3 : index
    %c0_9 = arith.constant 0 : index
    %17 = vector.load %arg8[%c3, %c0_9] : memref<8x512xf32, #tpu.memory_space<vmem>>, vector<1x512xf32>
    %18 = vector.shape_cast %17 : vector<1x512xf32> to vector<1x512xf32>
    %19 = vector.broadcast %18 : vector<1x512xf32> to vector<32x512xf32>
    %c4 = arith.constant 4 : index
    %c0_10 = arith.constant 0 : index
    %c0_11 = arith.constant 0 : index
    %20 = vector.load %arg4[%c4, %c0_10, %c0_11] : memref<9x32x1xf32, #tpu.memory_space<vmem>>, vector<1x32x1xf32>
    %21 = vector.shape_cast %20 : vector<1x32x1xf32> to vector<32x1xf32>
    %22 = vector.broadcast %21 : vector<32x1xf32> to vector<32x512xf32>
    %23 = arith.mulf %6, %22 : vector<32x512xf32>
    %c1_i32 = arith.constant 1 : i32
    %24 = tpu.dynamic_rotate %6 by %c1_i32 dim 1 : vector<32x512xf32>, i32 -> vector<32x512xf32>
    %25 = arith.mulf %24, %16 : vector<32x512xf32>
    %c3_12 = arith.constant 3 : index
    %c0_13 = arith.constant 0 : index
    %c0_14 = arith.constant 0 : index
    %26 = vector.load %arg4[%c3_12, %c0_13, %c0_14] : memref<9x32x1xf32, #tpu.memory_space<vmem>>, vector<1x32x1xf32>
    %27 = vector.shape_cast %26 : vector<1x32x1xf32> to vector<32x1xf32>
    %28 = vector.broadcast %27 : vector<32x1xf32> to vector<32x512xf32>
    %29 = arith.mulf %25, %28 : vector<32x512xf32>
    %30 = arith.addf %23, %29 : vector<32x512xf32>
    %c511_i32 = arith.constant 511 : i32
    %31 = tpu.dynamic_rotate %6 by %c511_i32 dim 1 : vector<32x512xf32>, i32 -> vector<32x512xf32>
    %32 = arith.mulf %31, %19 : vector<32x512xf32>
    %c5 = arith.constant 5 : index
    %c0_15 = arith.constant 0 : index
    %c0_16 = arith.constant 0 : index
    %33 = vector.load %arg4[%c5, %c0_15, %c0_16] : memref<9x32x1xf32, #tpu.memory_space<vmem>>, vector<1x32x1xf32>
    %34 = vector.shape_cast %33 : vector<1x32x1xf32> to vector<32x1xf32>
    %35 = vector.broadcast %34 : vector<32x1xf32> to vector<32x512xf32>
    %36 = arith.mulf %32, %35 : vector<32x512xf32>
    %37 = arith.addf %30, %36 : vector<32x512xf32>
    %c16_i32 = arith.constant 16 : i32
    %38 = tpu.dynamic_rotate %6 by %c16_i32 dim 1 : vector<32x512xf32>, i32 -> vector<32x512xf32>
    %39 = arith.mulf %38, %10 : vector<32x512xf32>
    %c1_17 = arith.constant 1 : index
    %c0_18 = arith.constant 0 : index
    %c0_19 = arith.constant 0 : index
    %40 = vector.load %arg4[%c1_17, %c0_18, %c0_19] : memref<9x32x1xf32, #tpu.memory_space<vmem>>, vector<1x32x1xf32>
    %41 = vector.shape_cast %40 : vector<1x32x1xf32> to vector<32x1xf32>
    %42 = vector.broadcast %41 : vector<32x1xf32> to vector<32x512xf32>
    %43 = arith.mulf %39, %42 : vector<32x512xf32>
    %44 = arith.addf %37, %43 : vector<32x512xf32>
    %c1_i32_20 = arith.constant 1 : i32
    %45 = tpu.dynamic_rotate %39 by %c1_i32_20 dim 1 : vector<32x512xf32>, i32 -> vector<32x512xf32>
    %46 = arith.mulf %45, %16 : vector<32x512xf32>
    %c0_21 = arith.constant 0 : index
    %c0_22 = arith.constant 0 : index
    %c0_23 = arith.constant 0 : index
    %47 = vector.load %arg4[%c0_21, %c0_22, %c0_23] : memref<9x32x1xf32, #tpu.memory_space<vmem>>, vector<1x32x1xf32>
    %48 = vector.shape_cast %47 : vector<1x32x1xf32> to vector<32x1xf32>
    %49 = vector.broadcast %48 : vector<32x1xf32> to vector<32x512xf32>
    %50 = arith.mulf %46, %49 : vector<32x512xf32>
    %51 = arith.addf %44, %50 : vector<32x512xf32>
    %c511_i32_24 = arith.constant 511 : i32
    %52 = tpu.dynamic_rotate %39 by %c511_i32_24 dim 1 : vector<32x512xf32>, i32 -> vector<32x512xf32>
    %53 = arith.mulf %52, %19 : vector<32x512xf32>
    %c2_25 = arith.constant 2 : index
    %c0_26 = arith.constant 0 : index
    %c0_27 = arith.constant 0 : index
    %54 = vector.load %arg4[%c2_25, %c0_26, %c0_27] : memref<9x32x1xf32, #tpu.memory_space<vmem>>, vector<1x32x1xf32>
    %55 = vector.shape_cast %54 : vector<1x32x1xf32> to vector<32x1xf32>
    %56 = vector.broadcast %55 : vector<32x1xf32> to vector<32x512xf32>
    %57 = arith.mulf %53, %56 : vector<32x512xf32>
    %58 = arith.addf %51, %57 : vector<32x512xf32>
    %c496_i32 = arith.constant 496 : i32
    %59 = tpu.dynamic_rotate %6 by %c496_i32 dim 1 : vector<32x512xf32>, i32 -> vector<32x512xf32>
    %60 = arith.mulf %59, %13 : vector<32x512xf32>
    %c7 = arith.constant 7 : index
    %c0_28 = arith.constant 0 : index
    %c0_29 = arith.constant 0 : index
    %61 = vector.load %arg4[%c7, %c0_28, %c0_29] : memref<9x32x1xf32, #tpu.memory_space<vmem>>, vector<1x32x1xf32>
    %62 = vector.shape_cast %61 : vector<1x32x1xf32> to vector<32x1xf32>
    %63 = vector.broadcast %62 : vector<32x1xf32> to vector<32x512xf32>
    %64 = arith.mulf %60, %63 : vector<32x512xf32>
    %65 = arith.addf %58, %64 : vector<32x512xf32>
    %c1_i32_30 = arith.constant 1 : i32
    %66 = tpu.dynamic_rotate %60 by %c1_i32_30 dim 1 : vector<32x512xf32>, i32 -> vector<32x512xf32>
    %67 = arith.mulf %66, %16 : vector<32x512xf32>
    %c6 = arith.constant 6 : index
    %c0_31 = arith.constant 0 : index
    %c0_32 = arith.constant 0 : index
    %68 = vector.load %arg4[%c6, %c0_31, %c0_32] : memref<9x32x1xf32, #tpu.memory_space<vmem>>, vector<1x32x1xf32>
    %69 = vector.shape_cast %68 : vector<1x32x1xf32> to vector<32x1xf32>
    %70 = vector.broadcast %69 : vector<32x1xf32> to vector<32x512xf32>
    %71 = arith.mulf %67, %70 : vector<32x512xf32>
    %72 = arith.addf %65, %71 : vector<32x512xf32>
    %c511_i32_33 = arith.constant 511 : i32
    %73 = tpu.dynamic_rotate %60 by %c511_i32_33 dim 1 : vector<32x512xf32>, i32 -> vector<32x512xf32>
    %74 = arith.mulf %73, %19 : vector<32x512xf32>
    %c8 = arith.constant 8 : index
    %c0_34 = arith.constant 0 : index
    %c0_35 = arith.constant 0 : index
    %75 = vector.load %arg4[%c8, %c0_34, %c0_35] : memref<9x32x1xf32, #tpu.memory_space<vmem>>, vector<1x32x1xf32>
    %76 = vector.shape_cast %75 : vector<1x32x1xf32> to vector<32x1xf32>
    %77 = vector.broadcast %76 : vector<32x1xf32> to vector<32x512xf32>
    %78 = arith.mulf %74, %77 : vector<32x512xf32>
    %79 = arith.addf %72, %78 : vector<32x512xf32>
    %c0_36 = arith.constant 0 : index
    %c0_37 = arith.constant 0 : index
    %80 = vector.load %arg5[%c0_36, %c0_37] : memref<32x1xf32, #tpu.memory_space<vmem>>, vector<32x1xf32>
    %81 = vector.broadcast %80 : vector<32x1xf32> to vector<32x512xf32>
    %82 = arith.addf %79, %81 : vector<32x512xf32>
    %83 = arith.negf %82 : vector<32x512xf32>
    %84 = math.exp %83 : vector<32x512xf32>
    %cst_38 = arith.constant 1.000000e+00 : f32
    %85 = vector.broadcast %cst_38 : f32 to vector<32x512xf32>
    %86 = arith.addf %85, %84 : vector<32x512xf32>
    %87 = arith.divf %85, %86 : vector<32x512xf32>
    %88 = arith.mulf %82, %87 : vector<32x512xf32>
    %89 = arith.mulf %88, %7 : vector<32x512xf32>
    %c0_39 = arith.constant 0 : index
    %c0_40 = arith.constant 0 : index
    %90 = vector.load %arg6[%c0_39, %c0_40] : memref<16x32xf32, #tpu.memory_space<vmem>>, vector<16x32xf32>
    %cst_41 = arith.constant dense<0.000000e+00> : vector<16x512xf32>
    %91 = tpu.matmul %90, %89, %cst_41 {dimension_numbers = #tpu.dot_dimension_numbers<[1], [0], [0], [1], [0, 0, 1, 1], [], []>} : vector<16x32xf32>, vector<32x512xf32>, vector<16x512xf32> -> vector<16x512xf32>
    %c0_42 = arith.constant 0 : index
    %c0_43 = arith.constant 0 : index
    %92 = vector.load %arg7[%c0_42, %c0_43] : memref<16x1xf32, #tpu.memory_space<vmem>>, vector<16x1xf32>
    %93 = vector.broadcast %92 : vector<16x1xf32> to vector<16x512xf32>
    %94 = arith.addf %91, %93 : vector<16x512xf32>
    %c0_44 = arith.constant 0 : index
    %c0_45 = arith.constant 0 : index
    %95 = vector.load %arg9[%c0_44, %c0_45] : memref<16x512xf32, #tpu.memory_space<vmem>>, vector<16x512xf32>
    tpu.vector_store %arg9[%c0_44, %c0_45], %94 {strides = array<i32>} : memref<16x512xf32, #tpu.memory_space<vmem>>, vector<16x512xf32>,
    return
  }
  func.func @transform_0(%arg0: i32) -> (i32, i32) {
    %c0_i32 = arith.constant 0 : i32
    %c0_i32_0 = arith.constant 0 : i32
    return %c0_i32, %arg0 : i32, i32
  }
  func.func @transform_1(%arg0: i32) -> (i32, i32) {
    %c0_i32 = arith.constant 0 : i32
    %c0_i32_0 = arith.constant 0 : i32
    %c0_i32_1 = arith.constant 0 : i32
    return %c0_i32, %c0_i32_0 : i32, i32
  }
  func.func @transform_2(%arg0: i32) -> (i32, i32) {
    %c0_i32 = arith.constant 0 : i32
    %c0_i32_0 = arith.constant 0 : i32
    %c0_i32_1 = arith.constant 0 : i32
    return %c0_i32, %c0_i32_0 : i32, i32
  }
  func.func @transform_3(%arg0: i32) -> (i32, i32, i32) {
    %c0_i32 = arith.constant 0 : i32
    %c0_i32_0 = arith.constant 0 : i32
    %c0_i32_1 = arith.constant 0 : i32
    %c0_i32_2 = arith.constant 0 : i32
    return %c0_i32, %c0_i32_0, %c0_i32_1 : i32, i32, i32
  }
  func.func @transform_4(%arg0: i32) -> (i32, i32) {
    %c0_i32 = arith.constant 0 : i32
    %c0_i32_0 = arith.constant 0 : i32
    %c0_i32_1 = arith.constant 0 : i32
    return %c0_i32, %c0_i32_0 : i32, i32
  }
  func.func @transform_5(%arg0: i32) -> (i32, i32) {
    %c0_i32 = arith.constant 0 : i32
    %c0_i32_0 = arith.constant 0 : i32
    %c0_i32_1 = arith.constant 0 : i32
    return %c0_i32, %c0_i32_0 : i32, i32
  }
  func.func @transform_6(%arg0: i32) -> (i32, i32) {
    %c0_i32 = arith.constant 0 : i32
    %c0_i32_0 = arith.constant 0 : i32
    %c0_i32_1 = arith.constant 0 : i32
    return %c0_i32, %c0_i32_0 : i32, i32
  }
  func.func @transform_7(%arg0: i32) -> (i32, i32) {
    %c0_i32 = arith.constant 0 : i32
    %c0_i32_0 = arith.constant 0 : i32
    %c0_i32_1 = arith.constant 0 : i32
    return %c0_i32, %c0_i32_0 : i32, i32
  }
  func.func @transform_8(%arg0: i32) -> (i32, i32) {
    %c0_i32 = arith.constant 0 : i32
    %c0_i32_0 = arith.constant 0 : i32
    return %c0_i32, %arg0 : i32, i32
  }
}

</mosaic_0001>

<bundles_post_ra>
// kernel: tpu_custom_call.1
= control target key start
LH: loop header
LB: loop body
LE: loop exit
PB: predicated region body
PF: predicated region fallthrough
CT: control target
= control target key end

     0   :  { %13 = vsyncpa [#allocation4], 0  ;;  %s4121_s0 = inlined_call_operand.vmem [shape: f32[16,1024], index: 0, kind: input, shape index: {}]   ;;  %s4122_s1 = inlined_call_operand.vmem [shape: f32[64,16], index: 1, kind: input, shape index: {}]   ;;  %s4123_s2 = inlined_call_operand.vmem [shape: f32[64,1], index: 2, kind: input, shape index: {}]   ;;  %s4124_s3 = inlined_call_operand.vmem [shape: f32[9,32,1], index: 3, kind: input, shape index: {}]   ;;  %s4125_s4 = inlined_call_operand.vmem [shape: f32[32,1], index: 4, kind: input, shape index: {}]   ;;  %s4126_s5 = inlined_call_operand.vmem [shape: f32[16,32], index: 5, kind: input, shape index: {}]   ;;  %s4127_s6 = inlined_call_operand.vmem [shape: f32[16,1], index: 6, kind: input, shape index: {}]   ;;  %s4128_s7 = inlined_call_operand.vmem [shape: f32[8,512], index: 7, kind: input, shape index: {}]   ;;  %s4129_s8 = inlined_call_operand.hbm [shape: f32[16,1024], index: 8, kind: output, shape index: {}]  }
   0x1   :  { %15 = vsyncpa [#allocation4 + $0x1], 0  ;;  %s2511_s27 = smov 0   ;;  %s2513_s28 = smov 0  }
   0x2   :  { %s2515_s29 = smov 0   ;;  %s2517_s30 = smov 0  }
   0x3 LB: > { %s2192_s9 = sadd.s32 4294967295, %s2454_s30   ;;  %s2193_s10 = sadd.s32 4294967294, %s2454_s30   ;;  %s2454_s30 = sphi %s2517_s30, %s4253_s30   ;;  %s2450_s29 = sphi %s2515_s29, %s4252_s29   ;;  %s2446_s28 = sphi %s2513_s28, %s4251_s28   ;;  %s2442_s27 = sphi %s2511_s27, %s4250_s27  }
   0x4   : > { %s2534_s11 = sadd.s32 1, %s2454_s30   ;;  %s28_s12 = sadd.s32 1, %s2450_s29 }
   0x5   : > { %s25_s13 = ssub.s32 %s2454_s30, %s2534_s11  ;;  %p35_p0 = scmp.ne.s32.totalorder %s2450_s29, %s2446_s28 }
   0x6   : > { %p26_p1 = scmp.eq.s32.totalorder %s25_s13, 0  ;;  %p36_p2 = scmp.eq.s32.totalorder %s2454_s30, 0 }
   0x7   : > { %p212_p3 = scmp.eq.s32.totalorder %s2192_s9, 1  ;;  %p217_p4 = scmp.ne.s32.totalorder %s2446_s28, %s2442_s27 }
   0x8   : > { %s2547_s14 = scalar_select %p26_p1, %s2450_s29, %s28_s12  }
   0x9   : > { %p37_p5 = por %p36_p2, %p35_p0  ;;  %p2549_p6 = por %p212_p3, %p35_p0 }
   0xa   : > { %p218_p7 = scmp.eq.s32.totalorder %s2193_s10, 1  ;;  %p2195_p9 = scmp.ge.s32.totalorder %s2454_s30, 2 }
   0xc   : > { %p2553_p8 = por %p218_p7, %p217_p4  ;;  %255 = sbr.rel (%p2195_p9) target bundleno = 25 (0x19), region = 44 }
  0x11   : > { %258 = sbr.rel (!%p37_p5) target bundleno = 25 (0x19), region = 48  ;;  %s260_s17 = sand.u32 (%p37_p5), 1, %s2450_s29  }
  0x12   : > { %s2278_s18 = sshll.u32 (%p37_p5), %s2454_s30, 5  ;;  %s2196_s19 = sshll.u32 (%p37_p5), %s260_s17, 6 }
  0x13   : > { %s265_s22 = scalar_lea.vmem (%p37_p5), %s4121_s0, %s2278_s18  ;;  %s262_s23 = scalar_lea.vmem (%p37_p5), [#allocation2], %s2196_s19 }
  0x14   : > { %v278_v0 = vld [vmem:[%s265_s22] sm:$0xff] (%p37_p5)  ;;  %v280_v1 = vld [vmem:[%s265_s22 + $0x8] sm:$0xff] (%p37_p5)  ;;  %v282_v2 = vld [vmem:[%s265_s22 + $0x10] sm:$0xff] (%p37_p5) }
  0x15   : > { %279 = vst [vmem:[%s262_s23] sm:$0xff] (%p37_p5), %v278_v0  ;;  %281 = vst [vmem:[%s262_s23 + $0x8] sm:$0xff] (%p37_p5), %v280_v1  ;;  %v284_v3 = vld [vmem:[%s265_s22 + $0x18] sm:$0xff] (%p37_p5)  ;;  %v286_v4 = vld [vmem:[%s265_s22 + $0x40] sm:$0xff] (%p37_p5) }
  0x16   : > { %283 = vst [vmem:[%s262_s23 + $0x10] sm:$0xff] %v282_v2  ;;  %v288_v5 = vld [vmem:[%s265_s22 + $0x48] sm:$0xff]  ;;  %285 = vst [vmem:[%s262_s23 + $0x18] sm:$0xff] %v284_v3  ;;  %v290_v6 = vld [vmem:[%s265_s22 + $0x50] sm:$0xff] }
  0x17   : > { %287 = vst [vmem:[%s262_s23 + $0x20] sm:$0xff] %v286_v4  ;;  %289 = vst [vmem:[%s262_s23 + $0x28] sm:$0xff] %v288_v5  ;;  %v292_v7 = vld [vmem:[%s265_s22 + $0x58] sm:$0xff] }
  0x18   : > { %291 = vst [vmem:[%s262_s23 + $0x30] sm:$0xff] %v290_v6  ;;  %293 = vst [vmem:[%s262_s23 + $0x38] sm:$0xff] %v292_v7 }
  0x19 PF: > { %p2199_p10 = scmp.ge.s32.totalorder %s2454_s30, 1  ;;  %p298_p11 = scmp.lt.s32.totalorder %s2454_s30, 3 }
  0x1b   : > { %p299_p12 = pnand %p2199_p10, %p298_p11 }
  0x1d   : > { %302 = sbr.rel (%p299_p12) target bundleno = 907 (0x38b), region = 71 }
  0x22   : > { %v356_v8 = vld [vmem:[%s4123_s2] sm:$0xff]  ;;  %s305_s26 = sand.u32 1, %s2446_s28   ;;  %v2456_v9 = vmov 0   ;;  %v4130_v10 = vmov 0.0   ;;  %v357_v11 = vld [vmem:[%s4123_s2 + $0x8] sm:$0xff]  ;;  %vm404_vm0 = vcmask 130048  }
  0x23   : > { %2328 = vset.pattern.permute.xlu0 %v2456_v9  ;;  %s2573_s10 = sshll.u32 %s305_s26, 6  ;;  %493 = vmatprep.mubr.f32.mxu0 %v4130_v10  ;;  %v340_v20 = vld [vmem:[%s4122_s1] sm:$0xff]  ;;  %v358_v22 = vld [vmem:[%s4123_s2 + $0x10] sm:$0xff]  ;;  %v341_v23 = vld [vmem:[%s4122_s1 + $0x8] sm:$0xff]  ;;  %s2458_s19 = smov 16   ;;  %vm1942_vm5 = vcmask 261120  }
  0x24   : > { %366 = vperm.xlu0 %2328, %v356_v8   ;;  %606 = vmatprep.mubr.f32.mxu1 %v4130_v10  ;;  %s307_s17 = scalar_lea.vmem [#allocation2], %s2573_s10  ;;  %v360_v21 = vld [vmem:[%s4123_s2 + $0x20] sm:$0xff]  ;;  %v362_v24 = vld [vmem:[%s4123_s2 + $0x30] sm:$0xff]  ;;  %v359_v25 = vld [vmem:[%s4123_s2 + $0x18] sm:$0xff]  ;;  %s2459_s20 = smov 1  }
  0x25   : > { %v353_v12 = vld [vmem:[%s307_s17 + $0x28] sm:$0xff]  ;;  %v355_v13 = vld [vmem:[%s307_s17 + $0x38] sm:$0xff]  ;;  %v352_v14 = vld [vmem:[%s307_s17 + $0x20] sm:$0xff]  ;;  %2329 = vset.pattern.permute.xlu1 %v2456_v9  ;;  %s2460_s21 = smov 112   ;;  %s2461_s22 = smov 127  }
  0x26   : > { %457 = vmatprep.subr.mxu0 %v353_v12  ;;  %570 = vmatprep.subr.mxu1 %v355_v13  ;;  %v354_v15 = vld [vmem:[%s307_s17 + $0x30] sm:$0xff]  ;;  %v349_v16 = vld [vmem:[%s307_s17 + $0x8] sm:$0xff]  ;;  %v351_v17 = vld [vmem:[%s307_s17 + $0x18] sm:$0xff]  ;;  %s337_s12 = scalar_lea.vmem [#allocation3], %s2573_s10 }
  0x27   : > { %458 = vmatpush1.msra.mxu0 %v352_v14  ;;  %571 = vmatpush1.msra.mxu1 %v354_v15  ;;  %v348_v18 = vld [vmem:[%s307_s17] sm:$0xff]  ;;  %v350_v19 = vld [vmem:[%s307_s17 + $0x10] sm:$0xff]  ;;  %v361_v28 = vld [vmem:[%s4123_s2 + $0x28] sm:$0xff]  ;;  %s2125_s13 = sshll.u32 %s337_s12, 4  ;;  %s2279_s17 = sshll.u32 %s2192_s9, 9  ;;  %s4071_s13 = int_to_ptr.vmem [resolvable:$true] %s2125_s13 }
  0x28   : > { %371 = vperm.xlu0 %2328, %v357_v11   ;;  %459 = vmatprep.subr.mxu0 %v349_v16  ;;  %v342_v26 = vld [vmem:[%s4122_s1 + $0x10] sm:$0xff]  ;;  %v2221_v27 = vld [vmem:[%s4124_s3 + $0x80] sm:$0xff]  ;;  %v343_v29 = vld [vmem:[%s4122_s1 + $0x18] sm:$0xff]  ;;  %s4076_s18 = scalar_lea.hbm %s4129_s8, %s2279_s17  ;;  %s4080_s9 = scalar_lea.sflag [#allocation4], %s305_s26 }
  0x29   : > { %572 = vmatprep.subr.mxu1 %v351_v17  ;;  %460 = vmatpush1.msra.mxu0 %v348_v18  ;;  %v2223_v30 = vld [vmem:[%s4124_s3 + $0x90] sm:$0xff]  ;;  %v363_v31 = vld [vmem:[%s4123_s2 + $0x38] sm:$0xff]  ;;  %v344_v32 = vld [vmem:[%s4122_s1 + $0x20] sm:$0xff] }
  0x2a   : > { %573 = vmatpush1.msra.mxu1 %v350_v19  ;;  %2202 = vmatmul.mubr.msk.f32.vlgmr.msra.gmra.mxu0 %vm404_vm0, %v340_v20  ;;  %v2232_v33 = vld [vmem:[%s4124_s3 + $0xb8] sm:$0xff]  ;;  %v2222_v34 = vld [vmem:[%s4124_s3 + $0x88] sm:$0xff]  ;;  %v346_v38 = vld [vmem:[%s4122_s1 + $0x30] sm:$0xff] }
  0x2b   : > { %2210 = vmatmul.mubr.msk.f32.vlgmr.msra.gmra.mxu1 %vm404_vm0, %v340_v20  ;;  %499 = vmatprep.mubr.f32.mxu0 %v4130_v10  ;;  %v345_v35 = vld [vmem:[%s4122_s1 + $0x28] sm:$0xff]  ;;  %v2224_v37 = vld [vmem:[%s4124_s3 + $0x98] sm:$0xff]  ;;  %v2225_v42 = vld [vmem:[%s4124_s3 + $0x60] sm:$0xff] }
  0x2c   : > { %386 = vperm.xlu0 %2328, %v360_v21   ;;  %612 = vmatprep.mubr.f32.mxu1 %v4130_v10  ;;  %v2226_v36 = vld [vmem:[%s4124_s3 + $0x68] sm:$0xff]  ;;  %v2236_v39 = vld [vmem:[%s4124_s3 + $0x38] sm:$0xff]  ;;  %v2227_v43 = vld [vmem:[%s4124_s3 + $0x70] sm:$0xff] }
  0x2d   : > { %376 = vperm.xlu1 %2329, %v358_v22   ;;  %v2228_v40 = vld [vmem:[%s4124_s3 + $0x78] sm:$0xff]  ;;  %v2235_v44 = vld [vmem:[%s4124_s3 + $0x30] sm:$0xff]  ;;  %v2229_v46 = vld [vmem:[%s4124_s3 + $0xa0] sm:$0xff] }
  0x2e   : > { %2203 = vmatmul.mubr.msk.f32.gmra.mxu0 %vm404_vm0, %v341_v23  ;;  %v347_v41 = vld [vmem:[%s4122_s1 + $0x38] sm:$0xff]  ;;  %v2231_v45 = vld [vmem:[%s4124_s3 + $0xb0] sm:$0xff]  ;;  %v2230_v47 = vld [vmem:[%s4124_s3 + $0xa8] sm:$0xff] }
  0x2f   : > { %2211 = vmatmul.mubr.msk.f32.gmra.mxu1 %vm404_vm0, %v341_v23  ;;  %505 = vmatprep.mubr.f32.mxu0 %v4130_v10  ;;  %v1221_v48 = vld [vmem:[%s4124_s3 + $0x10] sm:$0xff]  ;;  %v1222_v49 = vld [vmem:[%s4124_s3 + $0x18] sm:$0xff]  ;;  %v2233_v50 = vld [vmem:[%s4124_s3 + $0x20] sm:$0xff] }
  0x30   : > { %396 = vperm.xlu0 %2328, %v362_v24   ;;  %618 = vmatprep.mubr.f32.mxu1 %v4130_v10  ;;  %v2234_v51 = vld [vmem:[%s4124_s3 + $0x28] sm:$0xff]  ;;  %v2239_v52 = vld [vmem:[%s4124_s3 + $0x50] sm:$0xff]  ;;  %v2240_v53 = vld [vmem:[%s4124_s3 + $0x58] sm:$0xff] }
  0x31   : > { %381 = vperm.xlu1 %2329, %v359_v25   ;;  %v1219_v54 = vld [vmem:[%s4124_s3] sm:$0xff]  ;;  %v1220_v55 = vld [vmem:[%s4124_s3 + $0x8] sm:$0xff]  ;;  %v2243_v56 = vld [vmem:[%s4124_s3 + $0xf0] sm:$0xff] }
  0x32   : > { %2204 = vmatmul.mubr.msk.f32.gmra.mxu0 %vm404_vm0, %v342_v26  ;;  %v2244_v57 = vld [vmem:[%s4124_s3 + $0xf8] sm:$0xff]  ;;  %v2237_v58 = vld [vmem:[%s4124_s3 + $0x40] sm:$0xff]  ;;  %v2238_v59 = vld [vmem:[%s4124_s3 + $0x48] sm:$0xff] }
  0x33   : > { %2212 = vmatmul.mubr.msk.f32.gmra.mxu1 %vm404_vm0, %v342_v26  ;;  %511 = vmatprep.mubr.f32.mxu0 %v4130_v10  ;;  %v2247_v60 = vld [vmem:[%s4124_s3 + $0xd0] sm:$0xff]  ;;  %v2248_v61 = vld [vmem:[%s4124_s3 + $0xd8] sm:$0xff]  ;;  %v2241_v62 = vld [vmem:[%s4124_s3 + $0xe0] sm:$0xff] }
  0x34   : > { %753 = vperm.xlu0 %2328, %v2221_v27   ;;  %624 = vmatprep.mubr.f32.mxu1 %v4130_v10  ;;  %v2242_v63 = vld [vmem:[%s4124_s3 + $0xe8] sm:$0xff]  ;;  %v2251_v0 = vld [vmem:[%s4124_s3 + $0x110] sm:$0xff]  ;;  %v2252_v1 = vld [vmem:[%s4124_s3 + $0x118] sm:$0xff] }
  0x35   : > { %391 = vperm.xlu1 %2329, %v361_v28   ;;  %v2250_v2 = vld [vmem:[%s4124_s3 + $0x108] sm:$0xff]  ;;  %v2245_v4 = vld [vmem:[%s4124_s3 + $0xc0] sm:$0xff]  ;;  %v1763_v5 = vld [vmem:[%s4125_s4 + $0x18] sm:$0xff] }
  0x36   : > { %2205 = vmatmul.mubr.msk.f32.gmra.mxu0 %vm404_vm0, %v343_v29  ;;  %v2246_v3 = vld [vmem:[%s4124_s3 + $0xc8] sm:$0xff] }
  0x37   : > { %2213 = vmatmul.mubr.msk.f32.gmra.mxu1 %vm404_vm0, %v343_v29  ;;  %517 = vmatprep.mubr.f32.mxu0 %v4130_v10 }
  0x38   : > { %763 = vperm.xlu0 %2328, %v2223_v30   ;;  %630 = vmatprep.mubr.f32.mxu1 %v4130_v10 }
  0x39   : > { %401 = vperm.xlu1 %2329, %v363_v31  }
  0x3a   : > { %2206 = vmatmul.mubr.msk.f32.gmra.mxu0 %vm404_vm0, %v344_v32 }
  0x3b   : > { %2214 = vmatmul.mubr.msk.f32.gmra.mxu1 %vm404_vm0, %v344_v32  ;;  %523 = vmatprep.mubr.f32.mxu0 %v4130_v10 }
  0x3c   : > { %998 = vperm.xlu0 %2328, %v2232_v33   ;;  %636 = vmatprep.mubr.f32.mxu1 %v4130_v10 }
  0x3d   : > { %758 = vperm.xlu1 %2329, %v2222_v34  }
  0x3e   : > { %2207 = vmatmul.mubr.msk.f32.gmra.mxu0 %vm404_vm0, %v345_v35 }
  0x3f   : > { %2215 = vmatmul.mubr.msk.f32.gmra.mxu1 %vm404_vm0, %v345_v35  ;;  %529 = vmatprep.mubr.f32.mxu0 %v4130_v10 }
  0x40   : > { %866 = vperm.xlu0 %2328, %v2226_v36   ;;  %642 = vmatprep.mubr.f32.mxu1 %v4130_v10 }
  0x41   : > { %768 = vperm.xlu1 %2329, %v2224_v37  }
  0x42   : > { %2208 = vmatmul.mubr.msk.f32.gmra.mxu0 %vm404_vm0, %v346_v38 }
  0x43   : > { %2216 = vmatmul.mubr.msk.f32.gmra.mxu1 %vm404_vm0, %v346_v38  ;;  %535 = vmatprep.mubr.f32.mxu0 %v4130_v10 }
  0x44   : > { %1120 = vperm.xlu0 %2328, %v2236_v39   ;;  %648 = vmatprep.mubr.f32.mxu1 %v4130_v10 }
  0x45   : > { %876 = vperm.xlu1 %2329, %v2228_v40  }
  0x46   : > { %2209 = vmatmul.mubr.msk.f32.gmra.mxu0 %vm404_vm0, %v347_v41 }
  0x47   : > { %2217 = vmatmul.mubr.msk.f32.gmra.mxu1 %vm404_vm0, %v347_v41  ;;  %2013 = vmatprep.mubr.f32.mxu0 %v4130_v10 }
  0x48   : > { %861 = vperm.xlu0 %2328, %v2225_v42   ;;  %2090 = vmatprep.mubr.f32.mxu1 %v4130_v10 }
  0x49   : > { %871 = vperm.xlu1 %2329, %v2227_v43  }
  0x4c   : > { %1115 = vperm.xlu0 %2328, %v2235_v44  }
  0x4d   : > { %993 = vperm.xlu1 %2329, %v2231_v45  }
  0x50   : > { %983 = vperm.xlu0 %2328, %v2229_v46  }
  0x51   : > { %988 = vperm.xlu1 %2329, %v2230_v47  }
  0x54   : > { %1235 = vperm.xlu0 %2328, %v1221_v48  }
  0x55   : > { %1240 = vperm.xlu1 %2329, %v1222_v49  }
  0x58   : > { %1105 = vperm.xlu0 %2328, %v2233_v50  }
  0x59   : > { %1110 = vperm.xlu1 %2329, %v2234_v51  }
  0x5c   : > { %1356 = vperm.xlu0 %2328, %v2239_v52  }
  0x5d   : > { %1361 = vperm.xlu1 %2329, %v2240_v53  }
  0x60   : > { %1225 = vperm.xlu0 %2328, %v1219_v54  }
  0x61   : > { %1230 = vperm.xlu1 %2329, %v1220_v55  }
  0x64   : > { %1478 = vperm.xlu0 %2328, %v2243_v56  }
  0x65   : > { %1483 = vperm.xlu1 %2329, %v2244_v57  }
  0x68   : > { %1346 = vperm.xlu0 %2328, %v2237_v58  }
  0x69   : > { %1351 = vperm.xlu1 %2329, %v2238_v59  }
  0x6c   : > { %1599 = vperm.xlu0 %2328, %v2247_v60  }
  0x6d   : > { %1604 = vperm.xlu1 %2329, %v2248_v61  }
  0x70   : > { %1468 = vperm.xlu0 %2328, %v2241_v62  }
  0x71   : > { %1473 = vperm.xlu1 %2329, %v2242_v63  }
  0x74   : > { %1720 = vperm.xlu0 %2328, %v2251_v0  }
  0x75   : > { %1725 = vperm.xlu1 %2329, %v2252_v1  }
  0x78   : > { %1715 = vperm.xlu0 %2328, %v2250_v2  }
  0x79   : > { %1594 = vperm.xlu1 %2329, %v2246_v3  }
  0x7d   : > { %1589 = vperm.xlu1 %2329, %v2245_v4  }
  0x81   : > { %1781 = vperm.xlu1 %2329, %v1763_v5  }
  0x9f   : > { %v367_v6 = vpop.permute.xlu0 %366 }
  0xa3   : > { %v2765_v8 = vpop.permute.xlu0 %371 }
  0xa7   : > { %v2769_v11 = vpop.permute.xlu0 %386 }
  0xa8   : > { %v2763_v7 = vpop.permute.xlu1 %376  ;;  %4173 = vst [vmem:[#allocation6_spill] sm:$0xff] %v2769_v11 }
  0xab   : > { %v2779_v16 = vpop.permute.xlu0 %396 }
  0xac   : > { %v2767_v9 = vpop.permute.xlu1 %381  ;;  %4175 = vst [vmem:[#allocation8_spill] sm:$0xff] %v2779_v16 }
  0xaf   : > { %v2789_v19 = vpop.permute.xlu0 %753 }
  0xb0   : > { %v2771_v12 = vpop.permute.xlu1 %391 }
  0xb1   : > { %4174 = vst [vmem:[#allocation7_spill] sm:$0xff] %v2771_v12 }
  0xb3   : > { %v2801_v22 = vpop.permute.xlu0 %763 }
  0xb4   : > { %v2781_v17 = vpop.permute.xlu1 %401 }
  0xb5   : > { %4176 = vst [vmem:[#allocation9_spill] sm:$0xff] %v2781_v17  ;;  %v2220_v17 = vld [vmem:[%s4128_s7 + $0x3] ss:$8 sm:$0xf] }
  0xb7   : > { %v2813_v28 = vpop.permute.xlu0 %998 }
  0xb8   : > { %v2791_v20 = vpop.permute.xlu1 %758  ;;  %4178 = vst [vmem:[#allocation11_spill] sm:$0xff] %v2813_v28 }
  0xbb   : > { %v2828_v32 = vpop.permute.xlu0 %866 }
  0xbc   : > { %v2803_v23 = vpop.permute.xlu1 %768 }
  0xbd   : > { %4177 = vst [vmem:[#allocation10_spill] sm:$0xff] %v2803_v23 }
  0xbf   : > { %v2839_v35 = vpop.permute.xlu0 %1120 }
  0xc0   : > { %v2815_v29 = vpop.permute.xlu1 %876  ;;  %4180 = vst [vmem:[#allocation13_spill] sm:$0xff] %v2839_v35 }
  0xc1   : > { %4179 = vst [vmem:[#allocation12_spill] sm:$0xff] %v2815_v29 }
  0xc3   : > { %v2851_v37 = vpop.permute.xlu0 %861 }
  0xc4   : > { %v2830_v33 = vpop.permute.xlu1 %871 }
  0xc7   : > { %v2859_v40 = vpop.permute.xlu0 %1115 }
  0xc8   : > { %v2841_v36 = vpop.permute.xlu1 %993 }
  0xcb   : > { %v2874_v44 = vpop.permute.xlu0 %983 }
  0xcc   : > { %v2853_v38 = vpop.permute.xlu1 %988 }
  0xcf   : > { %v2885_v47 = vpop.permute.xlu0 %1235 }
  0xd0   : > { %v2861_v41 = vpop.permute.xlu1 %1240  ;;  %4182 = vst [vmem:[#allocation15_spill] sm:$0xff] %v2885_v47 }
  0xd1   : > { %4181 = vst [vmem:[#allocation14_spill] sm:$0xff] %v2861_v41 }
  0xd3   : > { %v2897_v50 = vpop.permute.xlu0 %1105 }
  0xd4   : > { %v2876_v45 = vpop.permute.xlu1 %1110 }
  0xd7   : > { %v2911_v56 = vpop.permute.xlu0 %1356 }
  0xd8   : > { %v2887_v48 = vpop.permute.xlu1 %1361  ;;  %4185 = vst [vmem:[#allocation18_spill] sm:$0xff] %v2911_v56 }
  0xd9   : > { %4183 = vst [vmem:[#allocation16_spill] sm:$0xff] %v2887_v48 }
  0xdb   : > { %v2926_v59 = vpop.permute.xlu0 %1225 }
  0xdc   : > { %v2902_v52 = vpop.permute.xlu1 %1230  ;;  %4187 = vst [vmem:[#allocation20_spill] sm:$0xff] %v2926_v59 }
  0xdd   : > { %4184 = vst [vmem:[#allocation17_spill] sm:$0xff] %v2902_v52 }
  0xdf   : > { %v2937_v63 = vpop.permute.xlu0 %1478 }
  0xe0   : > { %v2913_v57 = vpop.permute.xlu1 %1483  ;;  %4189 = vst [vmem:[#allocation22_spill] sm:$0xff] %v2937_v63 }
  0xe1   : > { %4186 = vst [vmem:[#allocation19_spill] sm:$0xff] %v2913_v57 }
  0xe3   : > { %v2949_v1 = vpop.permute.xlu0 %1346 }
  0xe4   : > { %v2928_v60 = vpop.permute.xlu1 %1351  ;;  %4191 = vst [vmem:[#allocation24_spill] sm:$0xff] %v2949_v1 }
  0xe5   : > { %4188 = vst [vmem:[#allocation21_spill] sm:$0xff] %v2928_v60 }
  0xe7   : > { %v2960_v5 = vpop.permute.xlu0 %1599 }
  0xe8   : > { %v2939_v0 = vpop.permute.xlu1 %1604  ;;  %4194 = vst [vmem:[#allocation27_spill] sm:$0xff] %v2960_v5 }
  0xe9   : > { %4190 = vst [vmem:[#allocation23_spill] sm:$0xff] %v2939_v0 }
  0xea   : > { %v495_v13 = vpop.f32.mrf.mxu0 }
  0xeb   : > { %v2773_v14 = vadd.f32 %v495_v13, %v367_v6  ;;  %v608_v15 = vpop.f32.mrf.mxu1 }
  0xec   : > { %v2783_v18 = vadd.f32 %v608_v15, %v367_v6  ;;  %v497_v21 = vpop.f32.mrf.mxu0  ;;  %v2951_v2 = vpop.permute.xlu1 %1473 }
  0xed   : > { %1033 = vrot.lane.b32.xlu1 %v2773_v14, %s2458_s19  ;;  %787 = vrot.lane.b32.xlu0 %v2773_v14, %s2459_s20  ;;  %v2805_v24 = vadd.f32 %v497_v21, %v367_v6  ;;  %v610_v25 = vpop.f32.mrf.mxu1  ;;  %4192 = vst [vmem:[#allocation25_spill] sm:$0xff] %v2951_v2  ;;  %v2975_v15 = vpop.permute.xlu0 %1468  ;;  %v655_v2 = vld [vmem:[%s4128_s7] ss:$8 sm:$0xf] }
  0xee   : > { %v2811_v26 = vadd.f32 %v610_v25, %v367_v6  ;;  %v501_v27 = vpop.f32.mrf.mxu0  ;;  %4197 = vst [vmem:[#allocation30_spill] sm:$0xff] %v2975_v15  ;;  %v773_v56 = vmul.f32 %v2789_v19, %v2783_v18 }
  0xef   : > { %v2822_v30 = vadd.f32 %v501_v27, %v2765_v8  ;;  %v614_v31 = vpop.f32.mrf.mxu1 }
  0xf0   : > { %v2833_v34 = vadd.f32 %v614_v31, %v2765_v8  ;;  %v503_v39 = vpop.f32.mrf.mxu0  ;;  %v2962_v6 = vpop.permute.xlu1 %1725 }
  0xf1   : > { %1049 = vrot.lane.b32.xlu1 %v2783_v18, %s2458_s19  ;;  %803 = vrot.lane.b32.xlu0 %v2783_v18, %s2459_s20  ;;  %v2868_v42 = vadd.f32 %v503_v39, %v2765_v8  ;;  %v616_v43 = vpop.f32.mrf.mxu1  ;;  %4195 = vst [vmem:[#allocation28_spill] sm:$0xff] %v2962_v6  ;;  %v2989_v39 = vpop.permute.xlu0 %1720  ;;  %v2219_v6 = vld [vmem:[%s4128_s7 + $0x2] ss:$8 sm:$0xf] }
  0xf2   : > { %v2879_v46 = vadd.f32 %v616_v43, %v2765_v8  ;;  %v507_v49 = vpop.f32.mrf.mxu0  ;;  %4201 = vst [vmem:[#allocation34_spill] sm:$0xff] %v2989_v39 }
  0xf3   : > { %v2900_v51 = vadd.f32 %v507_v49, %v2763_v7  ;;  %v620_v53 = vpop.f32.mrf.mxu1 }
  0xf4   : > { %v2909_v54 = vadd.f32 %v620_v53, %v2763_v7  ;;  %v509_v55 = vpop.f32.mrf.mxu0  ;;  %v2980_v25 = vpop.permute.xlu1 %1594 }
  0xf5   : > { %1396 = vrot.lane.b32.xlu1 %v2773_v14, %s2460_s21  ;;  %911 = vrot.lane.b32.xlu0 %v2773_v14, %s2461_s22  ;;  %v2920_v58 = vadd.f32 %v509_v55, %v2763_v7  ;;  %v622_v61 = vpop.f32.mrf.mxu1  ;;  %4199 = vst [vmem:[#allocation32_spill] sm:$0xff] %v2980_v25  ;;  %v3001_v49 = vpop.permute.xlu0 %1715 }
  0xf6   : > { %v2935_v62 = vadd.f32 %v622_v61, %v2763_v7  ;;  %v513_v3 = vpop.f32.mrf.mxu0  ;;  %4203 = vst [vmem:[#allocation36_spill] sm:$0xff] %v3001_v49  ;;  %v657_v61 = vlaneseq }
  0xf7   : > { %v2958_v4 = vadd.f32 %v513_v3, %v2767_v9  ;;  %v626_v7 = vpop.f32.mrf.mxu1 }
  0xf8   : > { %v2969_v8 = vadd.f32 %v626_v7, %v2767_v9  ;;  %v515_v13 = vpop.f32.mrf.mxu0  ;;  %v2991_v43 = vpop.permute.xlu1 %1589  ;;  %v3025_v12 = vand.u32 127, %v657_v61 }
  0xf9   : > { %1412 = vrot.lane.b32.xlu1 %v2783_v18, %s2460_s21  ;;  %927 = vrot.lane.b32.xlu0 %v2783_v18, %s2461_s22  ;;  %4193 = vst [vmem:[#allocation26_spill] sm:$0xff] %v2958_v4  ;;  %v2978_v21 = vadd.f32 %v515_v13, %v2767_v9  ;;  %v628_v27 = vpop.f32.mrf.mxu1  ;;  %4202 = vst [vmem:[#allocation35_spill] sm:$0xff] %v2991_v43  ;;  %v658_v13 = vshrl.u32 %v657_v61, 7 }
  0xfa   : > { %4196 = vst [vmem:[#allocation29_spill] sm:$0xff] %v2969_v8  ;;  %v2987_v31 = vadd.f32 %v628_v27, %v2767_v9  ;;  %vm943_vm1 = vcmp.lt.s32.totalorder %v3025_v12, 127  ;;  %vm821_vm2 = vcmp.lt.s32.totalorder %v3025_v12, 1  ;;  %vm1065_vm3 = vcmp.lt.s32.totalorder %v3025_v12, 16 }
  0xfb   : > { %4198 = vst [vmem:[#allocation31_spill] sm:$0xff] %v2978_v21  ;;  %v3023_v11 = vsub.s32 0, %v658_v13  ;;  %v3031_v16 = vsub.s32 1, %v658_v13  ;;  %v3043_v57 = vsub.s32 3, %v658_v13  ;;  %vm1428_vm4 = vcmp.lt.s32.totalorder %v3025_v12, 112 }
  0xfc   : > { %4200 = vst [vmem:[#allocation33_spill] sm:$0xff] %v2987_v31  ;;  %v3003_v9 = vpop.permute.xlu1 %1781 }
  0xfd   : > { %919 = vrot.lane.b32.xlu1 %v2805_v24, %s2461_s22  ;;  %795 = vrot.lane.b32.xlu0 %v2805_v24, %s2459_s20  ;;  %4204 = vst [vmem:[#allocation37_spill] sm:$0xff] %v3003_v9  ;;  %v3036_v9 = vsub.s32 2, %v658_v13  ;;  %v3046_v48 = vrot.slane %v2220_v17, %v3023_v11  ;;  %v3050_v41 = vrot.slane %v2220_v17, %v3031_v16 }
  0xfe   : > { %v3053_v39 = vrot.slane %v2219_v6, %v3031_v16  ;;  %v772_v13 = vmul.f32 %v2789_v19, %v2805_v24  ;;  %v3067_v25 = vrot.slane %v2220_v17, %v3043_v57  ;;  %v3085_v59 = vrot.slane %v2219_v6, %v3023_v11 }
  0xff   : > { %v3056_v5 = vrot.slane %v2219_v6, %v3036_v9  ;;  %v3064_v49 = vrot.slane %v2220_v17, %v3036_v9 }
 0x101   : > { %935 = vrot.lane.b32.xlu1 %v2811_v26, %s2461_s22  ;;  %811 = vrot.lane.b32.xlu0 %v2811_v26, %s2459_s20 }
 0x105   : > { %789 = vrot.lane.b32.xlu1 %v2822_v30, %s2459_s20  ;;  %1041 = vrot.lane.b32.xlu0 %v2805_v24, %s2458_s19 }
 0x109   : > { %805 = vrot.lane.b32.xlu1 %v2833_v34, %s2459_s20  ;;  %1057 = vrot.lane.b32.xlu0 %v2811_v26, %s2458_s19 }
 0x10d   : > { %1035 = vrot.lane.b32.xlu1 %v2822_v30, %s2458_s19  ;;  %1404 = vrot.lane.b32.xlu0 %v2805_v24, %s2460_s21 }
 0x111   : > { %1051 = vrot.lane.b32.xlu1 %v2833_v34, %s2458_s19  ;;  %1420 = vrot.lane.b32.xlu0 %v2811_v26, %s2460_s21 }
 0x115   : > { %1398 = vrot.lane.b32.xlu1 %v2822_v30, %s2460_s21  ;;  %913 = vrot.lane.b32.xlu0 %v2822_v30, %s2461_s22 }
 0x119   : > { %1414 = vrot.lane.b32.xlu1 %v2833_v34, %s2460_s21  ;;  %929 = vrot.lane.b32.xlu0 %v2833_v34, %s2461_s22 }
 0x11d   : > { %797 = vrot.lane.b32.xlu1 %v2868_v42, %s2459_s20  ;;  %1043 = vrot.lane.b32.xlu0 %v2868_v42, %s2458_s19 }
 0x121   : > { %813 = vrot.lane.b32.xlu1 %v2879_v46, %s2459_s20  ;;  %1059 = vrot.lane.b32.xlu0 %v2879_v46, %s2458_s19 }
 0x125   : > { %921 = vrot.lane.b32.xlu1 %v2868_v42, %s2461_s22  ;;  %1406 = vrot.lane.b32.xlu0 %v2868_v42, %s2460_s21 }
 0x129   : > { %937 = vrot.lane.b32.xlu1 %v2879_v46, %s2461_s22  ;;  %1422 = vrot.lane.b32.xlu0 %v2879_v46, %s2460_s21 }
 0x12d   : > { %1037 = vrot.lane.b32.xlu1 %v2900_v51, %s2458_s19  ;;  %791 = vrot.lane.b32.xlu0 %v2900_v51, %s2459_s20 }
 0x131   : > { %1053 = vrot.lane.b32.xlu1 %v2909_v54, %s2458_s19  ;;  %807 = vrot.lane.b32.xlu0 %v2909_v54, %s2459_s20 }
 0x135   : > { %1400 = vrot.lane.b32.xlu1 %v2900_v51, %s2460_s21  ;;  %799 = vrot.lane.b32.xlu0 %v2920_v58, %s2459_s20 }
 0x139   : > { %1416 = vrot.lane.b32.xlu1 %v2909_v54, %s2460_s21  ;;  %1045 = vrot.lane.b32.xlu0 %v2920_v58, %s2458_s19 }
 0x13d   : > { %915 = vrot.lane.b32.xlu1 %v2900_v51, %s2461_s22  ;;  %1061 = vrot.lane.b32.xlu0 %v2935_v62, %s2458_s19 }
 0x141   : > { %931 = vrot.lane.b32.xlu1 %v2909_v54, %s2461_s22  ;;  %1408 = vrot.lane.b32.xlu0 %v2920_v58, %s2460_s21 }
 0x145   : > { %815 = vrot.lane.b32.xlu1 %v2935_v62, %s2459_s20  ;;  %1424 = vrot.lane.b32.xlu0 %v2935_v62, %s2460_s21 }
 0x149   : > { %793 = vrot.lane.b32.xlu1 %v2958_v4, %s2459_s20  ;;  %923 = vrot.lane.b32.xlu0 %v2920_v58, %s2461_s22 }
 0x14d   : > { %809 = vrot.lane.b32.xlu1 %v2969_v8, %s2459_s20  ;;  %939 = vrot.lane.b32.xlu0 %v2935_v62, %s2461_s22 }
 0x151   : > { %1039 = vrot.lane.b32.xlu1 %v2958_v4, %s2458_s19  ;;  %1047 = vrot.lane.b32.xlu0 %v2978_v21, %s2458_s19 }
 0x155   : > { %1055 = vrot.lane.b32.xlu1 %v2969_v8, %s2458_s19  ;;  %1063 = vrot.lane.b32.xlu0 %v2987_v31, %s2458_s19  ;;  %s2394_s19 = scalar_lea.vmem %s4071_s13, 1024 }
 0x156   : > { %p2395_p13 = scmp.ne.s32.totalorder %s4071_s13, %s2394_s19 }
 0x158   : > { %p2396_p0 = pnand %p2395_p13, %p2549_p6 }
 0x159   : > { %1402 = vrot.lane.b32.xlu1 %v2958_v4, %s2460_s21  ;;  %1410 = vrot.lane.b32.xlu0 %v2978_v21, %s2460_s21 }
 0x15a   : > { %p2397_p1 = pneg %p2396_p0 }
 0x15d   : > { %1418 = vrot.lane.b32.xlu1 %v2969_v8, %s2460_s21  ;;  %1426 = vrot.lane.b32.xlu0 %v2987_v31, %s2460_s21  ;;  %s2462_s21 = smov [#allocation3]  }
 0x15f   : > { %v3009_v53 = vpop.permute.xlu1 %1033  ;;  %v788_v55 = vpop.permute.xlu0 %787 }
 0x161   : > { %917 = vrot.lane.b32.xlu1 %v2958_v4, %s2461_s22  ;;  %817 = vrot.lane.b32.xlu0 %v2987_v31, %s2459_s20  ;;  %v771_v4 = vmul.f32 %v2789_v19, %v2773_v14 }
 0x163   : > { %v3015_v3 = vpop.permute.xlu1 %1049  ;;  %v804_v7 = vpop.permute.xlu0 %803 }
 0x165   : > { %933 = vrot.lane.b32.xlu1 %v2969_v8, %s2461_s22  ;;  %925 = vrot.lane.b32.xlu0 %v2978_v21, %s2461_s22  ;;  %v3094_v8 = vrot.slane %v655_v2, %v3036_v9 }
 0x167   : > { %v3021_v27 = vpop.permute.xlu1 %1396  ;;  %v912_v10 = vpop.permute.xlu0 %911 }
 0x169   : > { %801 = vrot.lane.b32.xlu1 %v2978_v21, %s2459_s20  ;;  %941 = vrot.lane.b32.xlu0 %v2987_v31, %s2461_s22  ;;  %v3088_v21 = vrot.slane %v2219_v6, %v3043_v57 }
 0x16b   : > { %v3041_v61 = vpop.permute.xlu1 %1412  ;;  %v928_v0 = vpop.permute.xlu0 %927 }
 0x16f   : > { %v920_v63 = vpop.permute.xlu1 %919  ;;  %v796_v47 = vpop.permute.xlu0 %795 }
 0x170   : > { %v948_v60 = vsel %vm943_vm1, %v920_v63, %v928_v0  ;;  %v952_v24 = vsel %vm943_vm1, %v912_v10, %v920_v63  ;;  %v826_v18 = vsel %vm821_vm2, %v796_v47, %v804_v7  ;;  %v830_v52 = vsel %vm821_vm2, %v788_v55, %v796_v47 }
 0x171   : > { %v960_v43 = vmul.f32 %v952_v24, %v3046_v48  ;;  %v961_v17 = vmul.f32 %v948_v60, %v3050_v41  ;;  %v839_v15 = vmul.f32 %v830_v52, %v3053_v39  ;;  %v840_v1 = vmul.f32 %v826_v18, %v3056_v5 }
 0x172   : > { %v3091_v63 = vrot.slane %v655_v2, %v3031_v16 }
 0x173   : > { %v1002_v47 = vmul.f32 %v2874_v44, %v961_v17  ;;  %v880_v60 = vmul.f32 %v2851_v37, %v839_v15  ;;  %v881_v52 = vmul.f32 %v2851_v37, %v840_v1  ;;  %v936_v24 = vpop.permute.xlu1 %935  ;;  %v812_v18 = vpop.permute.xlu0 %811 }
 0x174   : > { %v944_v6 = vsel %vm943_vm1, %v928_v0, %v936_v24  ;;  %v956_v31 = vsel %vm943_vm1, %v936_v24, %v912_v10  ;;  %v822_v28 = vsel %vm821_vm2, %v804_v7, %v812_v18  ;;  %v834_v17 = vsel %vm821_vm2, %v812_v18, %v788_v55 }
 0x175   : > { %v896_v35 = vadd.f32 %v880_v60, %v772_v13  ;;  %v897_v15 = vadd.f32 %v881_v52, %v773_v56  ;;  %v962_v1 = vmul.f32 %v944_v6, %v3064_v49  ;;  %v963_v23 = vmul.f32 %v956_v31, %v3067_v25 }
 0x176   : > { %v838_v0 = vmul.f32 %v834_v17, %v3085_v59  ;;  %v841_v29 = vmul.f32 %v822_v28, %v3088_v21  ;;  %v774_v7 = vmul.f32 %v2789_v19, %v2811_v26  ;;  %v3120_v13 = vrot.slane %v655_v2, %v3023_v11 }
 0x177   : > { %v1018_v10 = vadd.f32 %v1002_v47, %v896_v35  ;;  %v1003_v24 = vmul.f32 %v2874_v44, %v962_v1  ;;  %v3117_v55 = vpop.permute.xlu1 %789  ;;  %v1042_v56 = vpop.permute.xlu0 %1041  ;;  %v3133_v60 = vrot.slane %v655_v2, %v3043_v57  ;;  %v1001_v52 = vmul.f32 %v2874_v44, %v960_v43 }
 0x178   : > { %v879_v31 = vmul.f32 %v2851_v37, %v838_v0  ;;  %v882_v14 = vmul.f32 %v2851_v37, %v841_v29  ;;  %v1070_v28 = vsel %vm1065_vm3, %v1042_v56, %v3015_v3  ;;  %v1074_v35 = vsel %vm1065_vm3, %v3009_v53, %v1042_v56 }
 0x179   : > { %v1019_v47 = vadd.f32 %v1003_v24, %v897_v15  ;;  %v1083_v19 = vmul.f32 %v1074_v35, %v3091_v63  ;;  %v1084_v26 = vmul.f32 %v1070_v28, %v3094_v8  ;;  %v1004_v29 = vmul.f32 %v2874_v44, %v963_v23 }
 0x17a   : > { %v895_v37 = vadd.f32 %v879_v31, %v771_v4  ;;  %v898_v18 = vadd.f32 %v882_v14, %v774_v7 }
 0x17b   : > { %v1124_v6 = vmul.f32 %v2897_v50, %v1083_v19  ;;  %v1125_v17 = vmul.f32 %v2897_v50, %v1084_v26  ;;  %v3139_v1 = vpop.permute.xlu1 %805  ;;  %1163 = vrot.lane.b32.xlu1 %v1083_v19, %s2459_s20  ;;  %v1058_v15 = vpop.permute.xlu0 %1057 }
 0x17c   : > { %v1017_v0 = vadd.f32 %v1001_v52, %v895_v37  ;;  %v1020_v24 = vadd.f32 %v1004_v29, %v898_v18  ;;  %v1066_v2 = vsel %vm1065_vm3, %v3015_v3, %v1058_v15  ;;  %v1078_v23 = vsel %vm1065_vm3, %v1058_v15, %v3009_v53 }
 0x17d   : > { %v1082_v44 = vmul.f32 %v1078_v23, %v3120_v13  ;;  %v1085_v4 = vmul.f32 %v1066_v2, %v3133_v60  ;;  %v3150_v43 = vadd.f32 %v1124_v6, %v1018_v10  ;;  %v3152_v7 = vadd.f32 %v1125_v17, %v1019_v47  ;;  %v2218_v10 = vld [vmem:[%s4128_s7 + $0x1] ss:$8 sm:$0xf] }
 0x17e   : > { %v3169_v47 = vrot.slane %v2218_v10, %v3031_v16  ;;  %v3181_v18 = vrot.slane %v2218_v10, %v3023_v11  ;;  %v3187_v16 = vrot.slane %v2218_v10, %v3043_v57  ;;  %v3204_v57 = vrot.slane %v2218_v10, %v3036_v9 }
 0x17f   : > { %v1123_v56 = vmul.f32 %v2897_v50, %v1082_v44  ;;  %v1126_v31 = vmul.f32 %v2897_v50, %v1085_v4  ;;  %v1036_v14 = vpop.permute.xlu1 %1035  ;;  %1155 = vrot.lane.b32.xlu0 %v1082_v44, %s2459_s20  ;;  %1179 = vrot.lane.b32.xlu1 %v1085_v4, %s2459_s20  ;;  %v1405_v3 = vpop.permute.xlu0 %1404  ;;  %v777_v10 = vmul.f32 %v2791_v20, %v2833_v34 }
 0x180   : > { %v1433_v52 = vsel %vm1428_vm4, %v1405_v3, %v3041_v61  ;;  %v1437_v6 = vsel %vm1428_vm4, %v3021_v27, %v1405_v3  ;;  %v776_v3 = vmul.f32 %v2791_v20, %v2868_v42 }
 0x181   : > { %v3158_v28 = vadd.f32 %v1123_v56, %v1017_v0  ;;  %v3160_v53 = vadd.f32 %v1126_v31, %v1020_v24  ;;  %v3201_v0 = vmul.f32 %v1437_v6, %v3181_v18 }
 0x183   : > { %v1052_v35 = vpop.permute.xlu1 %1051  ;;  %1171 = vrot.lane.b32.xlu0 %v1084_v26, %s2459_s20  ;;  %1283 = vrot.lane.b32.xlu1 %v1083_v19, %s2461_s22  ;;  %v1421_v50 = vpop.permute.xlu0 %1420  ;;  %v3184_v19 = vmul.f32 %v1433_v52, %v3169_v47 }
 0x184   : > { %v1441_v17 = vsel %vm1428_vm4, %v1421_v50, %v3021_v27  ;;  %v1429_v27 = vsel %vm1428_vm4, %v3041_v61, %v1421_v50 }
 0x185   : > { %v3207_v24 = vmul.f32 %v1441_v17, %v3187_v16  ;;  %v3225_v61 = vmul.f32 %v1429_v27, %v3204_v57 }
 0x187   : > { %v3174_v29 = vpop.permute.xlu1 %1398  ;;  %1275 = vrot.lane.b32.xlu0 %v1082_v44, %s2461_s22  ;;  %1299 = vrot.lane.b32.xlu1 %v1085_v4, %s2461_s22  ;;  %v3178_v37 = vpop.permute.xlu0 %913  ;;  %4205 = vst [vmem:[#allocation38_spill] sm:$0xff] %v3225_v61 }
 0x18b   : > { %v3195_v15 = vpop.permute.xlu1 %1414  ;;  %1291 = vrot.lane.b32.xlu0 %v1084_v26, %s2461_s22  ;;  %1526 = vrot.lane.b32.xlu1 %v3184_v19, %s2459_s20  ;;  %v930_v11 = vpop.permute.xlu0 %929 }
 0x18f   : > { %v798_v2 = vpop.permute.xlu1 %797  ;;  %1518 = vrot.lane.b32.xlu0 %v3201_v0, %s2459_s20  ;;  %1542 = vrot.lane.b32.xlu1 %v3207_v24, %s2459_s20  ;;  %v1044_v26 = vpop.permute.xlu0 %1043 }
 0x190   : > { %v827_v9 = vsel %vm821_vm2, %v798_v2, %v3139_v1  ;;  %v831_v23 = vsel %vm821_vm2, %v3117_v55, %v798_v2  ;;  %v1075_v44 = vsel %vm1065_vm3, %v1036_v14, %v1044_v26 }
 0x191   : > { %v843_v4 = vmul.f32 %v831_v23, %v3053_v39  ;;  %v844_v56 = vmul.f32 %v827_v9, %v3056_v5  ;;  %v1087_v31 = vmul.f32 %v1075_v44, %v3091_v63 }
 0x193   : > { %v884_v50 = vmul.f32 %v2828_v32, %v843_v4  ;;  %v885_v52 = vmul.f32 %v2828_v32, %v844_v56  ;;  %v814_v6 = vpop.permute.xlu1 %813  ;;  %1534 = vrot.lane.b32.xlu0 %v3225_v61, %s2459_s20  ;;  %v1060_v17 = vpop.permute.xlu0 %1059  ;;  %1165 = vrot.lane.b32.xlu1 %v1087_v31, %s2459_s20  ;;  %v778_v61 = vmul.f32 %v2791_v20, %v2879_v46 }
 0x194   : > { %v823_v27 = vsel %vm821_vm2, %v3139_v1, %v814_v6  ;;  %v835_v42 = vsel %vm821_vm2, %v814_v6, %v3117_v55  ;;  %v1067_v34 = vsel %vm1065_vm3, %v1052_v35, %v1060_v17  ;;  %v1079_v2 = vsel %vm1065_vm3, %v1060_v17, %v1036_v14 }
 0x195   : > { %v900_v9 = vadd.f32 %v884_v50, %v776_v3  ;;  %v901_v23 = vadd.f32 %v885_v52, %v777_v10  ;;  %v842_v44 = vmul.f32 %v835_v42, %v3085_v59  ;;  %v845_v4 = vmul.f32 %v823_v27, %v3088_v21 }
 0x196   : > { %v775_v1 = vmul.f32 %v2791_v20, %v2822_v30  ;;  %v1086_v56 = vmul.f32 %v1079_v2, %v3120_v13  ;;  %v1089_v55 = vmul.f32 %v1067_v34, %v3133_v60  ;;  %v1071_v6 = vsel %vm1065_vm3, %v1044_v26, %v1052_v35 }
 0x197   : > { %v883_v14 = vmul.f32 %v2828_v32, %v842_v44  ;;  %v886_v3 = vmul.f32 %v2828_v32, %v845_v4  ;;  %v922_v10 = vpop.permute.xlu1 %921  ;;  %v1407_v50 = vpop.permute.xlu0 %1406  ;;  %v1088_v32 = vmul.f32 %v1071_v6, %v3094_v8  ;;  %v1128_v44 = vmul.f32 %v2876_v45, %v1087_v31 }
 0x198   : > { %v949_v52 = vsel %vm943_vm1, %v922_v10, %v930_v11  ;;  %v953_v30 = vsel %vm943_vm1, %v3178_v37, %v922_v10  ;;  %1157 = vrot.lane.b32.xlu0 %v1086_v56, %s2459_s20  ;;  %1181 = vrot.lane.b32.xlu1 %v1089_v55, %s2459_s20  ;;  %v1127_v4 = vmul.f32 %v2876_v45, %v1086_v56 }
 0x199   : > { %v899_v17 = vadd.f32 %v883_v14, %v775_v1  ;;  %v902_v35 = vadd.f32 %v886_v3, %v778_v61  ;;  %v964_v26 = vmul.f32 %v953_v30, %v3046_v48  ;;  %v965_v20 = vmul.f32 %v949_v52, %v3050_v41 }
 0x19b   : > { %v1005_v46 = vmul.f32 %v2853_v38, %v964_v26  ;;  %v1006_v27 = vmul.f32 %v2853_v38, %v965_v20  ;;  %v938_v42 = vpop.permute.xlu1 %937  ;;  %v1423_v34 = vpop.permute.xlu0 %1422 }
 0x19c   : > { %v945_v2 = vsel %vm943_vm1, %v930_v11, %v938_v42  ;;  %v957_v61 = vsel %vm943_vm1, %v938_v42, %v3178_v37  ;;  %1173 = vrot.lane.b32.xlu0 %v1088_v32, %s2459_s20  ;;  %1285 = vrot.lane.b32.xlu1 %v1087_v31, %s2461_s22  ;;  %v1438_v37 = vsel %vm1428_vm4, %v3174_v29, %v1407_v50 }
 0x19d   : > { %v1021_v1 = vadd.f32 %v1005_v46, %v899_v17  ;;  %v1022_v6 = vadd.f32 %v1006_v27, %v900_v9  ;;  %v966_v14 = vmul.f32 %v945_v2, %v3064_v49  ;;  %v967_v3 = vmul.f32 %v957_v61, %v3067_v25 }
 0x19e   : > { %v1129_v31 = vmul.f32 %v2876_v45, %v1088_v32  ;;  %v1130_v17 = vmul.f32 %v2876_v45, %v1089_v55  ;;  %v1434_v27 = vsel %vm1428_vm4, %v1407_v50, %v3195_v15  ;;  %v3301_v42 = vmul.f32 %v1438_v37, %v3181_v18 }
 0x19f   : > { %v1038_v10 = vpop.permute.xlu1 %1037  ;;  %v792_v11 = vpop.permute.xlu0 %791  ;;  %v3284_v52 = vadd.f32 %v1127_v4, %v1021_v1  ;;  %v3286_v30 = vadd.f32 %v1128_v44, %v1022_v6  ;;  %v1007_v26 = vmul.f32 %v2853_v38, %v966_v14  ;;  %v1008_v9 = vmul.f32 %v2853_v38, %v967_v3 }
 0x1a0   : > { %1277 = vrot.lane.b32.xlu0 %v1086_v56, %s2461_s22  ;;  %1301 = vrot.lane.b32.xlu1 %v1089_v55, %s2461_s22  ;;  %v1430_v38 = vsel %vm1428_vm4, %v3195_v15, %v1423_v34  ;;  %v1442_v55 = vsel %vm1428_vm4, %v1423_v34, %v3174_v29 }
 0x1a1   : > { %v1023_v20 = vadd.f32 %v1007_v26, %v901_v23  ;;  %v1024_v46 = vadd.f32 %v1008_v9, %v902_v35  ;;  %v3314_v23 = vmul.f32 %v1434_v27, %v3169_v47  ;;  %v3320_v50 = vmul.f32 %v1430_v38, %v3204_v57 }
 0x1a2   : > { %v3335_v4 = vmul.f32 %v1442_v55, %v3187_v16 }
 0x1a3   : > { %v1054_v2 = vpop.permute.xlu1 %1053  ;;  %v808_v61 = vpop.permute.xlu0 %807  ;;  %v3307_v56 = vadd.f32 %v1129_v31, %v1023_v20  ;;  %v3309_v45 = vadd.f32 %v1130_v17, %v1024_v46  ;;  %4206 = vst [vmem:[#allocation39_spill] sm:$0xff] %v3314_v23  ;;  %4207 = vst [vmem:[#allocation40_spill] sm:$0xff] %v3320_v50 }
 0x1a4   : > { %1293 = vrot.lane.b32.xlu0 %v1088_v32, %s2461_s22  ;;  %1520 = vrot.lane.b32.xlu1 %v3301_v42, %s2459_s20  ;;  %4208 = vst [vmem:[#allocation41_spill] sm:$0xff] %v3335_v4 }
 0x1a7   : > { %v3322_v15 = vpop.permute.xlu1 %1400  ;;  %v800_v35 = vpop.permute.xlu0 %799 }
 0x1a8   : > { %1528 = vrot.lane.b32.xlu0 %v3314_v23, %s2459_s20  ;;  %v828_v32 = vsel %vm821_vm2, %v800_v35, %v808_v61  ;;  %v832_v44 = vsel %vm821_vm2, %v792_v11, %v800_v35  ;;  %1536 = vrot.lane.b32.xlu1 %v3320_v50, %s2459_s20 }
 0x1a9   : > { %v847_v29 = vmul.f32 %v832_v44, %v3053_v39  ;;  %v848_v34 = vmul.f32 %v828_v32, %v3056_v5 }
 0x1ab   : > { %v3337_v1 = vpop.permute.xlu1 %1416  ;;  %v1046_v6 = vpop.permute.xlu0 %1045 }
 0x1ac   : > { %1544 = vrot.lane.b32.xlu0 %v3335_v4, %s2459_s20  ;;  %1649 = vrot.lane.b32.xlu1 %v3314_v23, %s2461_s22  ;;  %v1076_v9 = vsel %vm1065_vm3, %v1038_v10, %v1046_v6  ;;  %v1072_v20 = vsel %vm1065_vm3, %v1046_v6, %v1054_v2 }
 0x1ad   : > { %v1091_v46 = vmul.f32 %v1076_v9, %v3091_v63  ;;  %v1092_v27 = vmul.f32 %v1072_v20, %v3094_v8 }
 0x1af   : > { %v916_v14 = vpop.permute.xlu1 %915  ;;  %v1062_v3 = vpop.permute.xlu0 %1061 }
 0x1b0   : > { %1641 = vrot.lane.b32.xlu0 %v3301_v42, %s2461_s22  ;;  %v1080_v37 = vsel %vm1065_vm3, %v1062_v3, %v1038_v10  ;;  %1665 = vrot.lane.b32.xlu1 %v3335_v4, %s2461_s22  ;;  %v1068_v38 = vsel %vm1065_vm3, %v1054_v2, %v1062_v3 }
 0x1b1   : > { %v1090_v26 = vmul.f32 %v1080_v37, %v3120_v13  ;;  %v888_v37 = vmul.f32 %v2830_v33, %v847_v29  ;;  %v1093_v2 = vmul.f32 %v1068_v38, %v3133_v60  ;;  %v781_v29 = vmul.f32 %v2801_v22, %v2909_v54 }
 0x1b2   : > { %v779_v38 = vmul.f32 %v2801_v22, %v2900_v51 }
 0x1b3   : > { %v932_v31 = vpop.permute.xlu1 %931  ;;  %v1409_v17 = vpop.permute.xlu0 %1408 }
 0x1b4   : > { %1657 = vrot.lane.b32.xlu0 %v3320_v50, %s2461_s22  ;;  %1159 = vrot.lane.b32.xlu1 %v1090_v26, %s2459_s20  ;;  %v782_v50 = vmul.f32 %v2801_v22, %v2935_v62  ;;  %v1439_v54 = vsel %vm1428_vm4, %v3322_v15, %v1409_v17 }
 0x1b7   : > { %v816_v55 = vpop.permute.xlu1 %815  ;;  %v1425_v35 = vpop.permute.xlu0 %1424 }
 0x1b8   : > { %v824_v10 = vsel %vm821_vm2, %v808_v61, %v816_v55  ;;  %v836_v32 = vsel %vm821_vm2, %v816_v55, %v792_v11  ;;  %1167 = vrot.lane.b32.xlu0 %v1091_v46, %s2459_s20  ;;  %1175 = vrot.lane.b32.xlu1 %v1092_v27, %s2459_s20  ;;  %v780_v11 = vmul.f32 %v2801_v22, %v2920_v58 }
 0x1b9   : > { %v846_v44 = vmul.f32 %v836_v32, %v3085_v59  ;;  %v849_v6 = vmul.f32 %v824_v10, %v3088_v21  ;;  %v889_v32 = vmul.f32 %v2830_v33, %v848_v34  ;;  %v1132_v34 = vmul.f32 %v2859_v40, %v1091_v46 }
 0x1bb   : > { %v887_v3 = vmul.f32 %v2830_v33, %v846_v44  ;;  %v3372_v9 = vpop.permute.xlu1 %793  ;;  %v924_v61 = vpop.permute.xlu0 %923  ;;  %v904_v44 = vadd.f32 %v888_v37, %v780_v11  ;;  %v1131_v37 = vmul.f32 %v2859_v40, %v1090_v26 }
 0x1bc   : > { %1183 = vrot.lane.b32.xlu0 %v1093_v2, %s2459_s20  ;;  %v950_v20 = vsel %vm943_vm1, %v924_v61, %v932_v31  ;;  %v954_v55 = vsel %vm943_vm1, %v916_v14, %v924_v61  ;;  %1279 = vrot.lane.b32.xlu1 %v1090_v26, %s2461_s22  ;;  %v890_v61 = vmul.f32 %v2830_v33, %v849_v6 }
 0x1bd   : > { %v968_v10 = vmul.f32 %v954_v55, %v3046_v48  ;;  %v969_v58 = vmul.f32 %v950_v20, %v3050_v41  ;;  %v903_v23 = vadd.f32 %v887_v3, %v779_v38  ;;  %v905_v38 = vadd.f32 %v889_v32, %v781_v29 }
 0x1be   : > { %v1435_v26 = vsel %vm1428_vm4, %v1409_v17, %v3337_v1  ;;  %v1431_v29 = vsel %vm1428_vm4, %v3337_v1, %v1425_v35  ;;  %v1133_v17 = vmul.f32 %v2859_v40, %v1092_v27 }
 0x1bf   : > { %v1009_v51 = vmul.f32 %v2841_v36, %v968_v10  ;;  %v1010_v4 = vmul.f32 %v2841_v36, %v969_v58  ;;  %v3397_v55 = vpop.permute.xlu1 %809  ;;  %v940_v20 = vpop.permute.xlu0 %939  ;;  %v3436_v1 = vmul.f32 %v1431_v29, %v3204_v57  ;;  %v4211_v29 = vld [vmem:[#allocation12_spill] sm:$0xff] }
 0x1c0   : > { %1287 = vrot.lane.b32.xlu0 %v1091_v46, %s2461_s22  ;;  %v946_v22 = vsel %vm943_vm1, %v932_v31, %v940_v20  ;;  %v958_v33 = vsel %vm943_vm1, %v940_v20, %v916_v14  ;;  %1295 = vrot.lane.b32.xlu1 %v1092_v27, %s2461_s22  ;;  %v3413_v46 = vmul.f32 %v1439_v54, %v3181_v18 }
 0x1c1   : > { %v1025_v62 = vadd.f32 %v1009_v51, %v903_v23  ;;  %v1026_v6 = vadd.f32 %v1010_v4, %v904_v44  ;;  %v970_v3 = vmul.f32 %v946_v22, %v3064_v49  ;;  %v971_v11 = vmul.f32 %v958_v33, %v3067_v25  ;;  %4209 = vst [vmem:[#allocation42_spill] sm:$0xff] %v3436_v1 }
 0x1c2   : > { %v906_v31 = vadd.f32 %v890_v61, %v782_v50  ;;  %v1134_v50 = vmul.f32 %v2859_v40, %v1093_v2  ;;  %v1443_v54 = vsel %vm1428_vm4, %v1425_v35, %v3322_v15 }
 0x1c3   : > { %v1011_v10 = vmul.f32 %v2841_v36, %v970_v3  ;;  %v1012_v23 = vmul.f32 %v2841_v36, %v971_v11  ;;  %v1040_v4 = vpop.permute.xlu1 %1039  ;;  %v1048_v14 = vpop.permute.xlu0 %1047  ;;  %v3417_v58 = vadd.f32 %v1132_v34, %v1026_v6  ;;  %v3419_v44 = vadd.f32 %v1131_v37, %v1025_v62 }
 0x1c4   : > { %1303 = vrot.lane.b32.xlu0 %v1093_v2, %s2461_s22  ;;  %1522 = vrot.lane.b32.xlu1 %v3413_v46, %s2459_s20  ;;  %v3430_v36 = vmul.f32 %v1435_v26, %v3169_v47  ;;  %v3447_v2 = vmul.f32 %v1443_v54, %v3187_v16  ;;  %v1077_v22 = vsel %vm1065_vm3, %v1040_v4, %v1048_v14 }
 0x1c5   : > { %v1027_v32 = vadd.f32 %v1011_v10, %v905_v38  ;;  %v1028_v61 = vadd.f32 %v1012_v23, %v906_v31  ;;  %v1095_v33 = vmul.f32 %v1077_v22, %v3091_v63  ;;  %v4213_v22 = vld [vmem:[#allocation10_spill] sm:$0xff] }
 0x1c6   : > { %4210 = vst [vmem:[#allocation43_spill] sm:$0xff] %v3447_v2 }
 0x1c7   : > { %v1056_v51 = vpop.permute.xlu1 %1055  ;;  %v1064_v20 = vpop.permute.xlu0 %1063  ;;  %v3438_v27 = vadd.f32 %v1133_v17, %v1027_v32  ;;  %v3440_v40 = vadd.f32 %v1134_v50, %v1028_v61 }
 0x1c8   : > { %1530 = vrot.lane.b32.xlu0 %v3430_v36, %s2459_s20  ;;  %1538 = vrot.lane.b32.xlu1 %v3436_v1, %s2459_s20  ;;  %v1081_v62 = vsel %vm1065_vm3, %v1064_v20, %v1040_v4  ;;  %v1069_v11 = vsel %vm1065_vm3, %v1056_v51, %v1064_v20  ;;  %v1073_v23 = vsel %vm1065_vm3, %v1048_v14, %v1056_v51  ;;  %v4212_v20 = vld [vmem:[#allocation26_spill] sm:$0xff] }
 0x1c9   : > { %v1094_v10 = vmul.f32 %v1081_v62, %v3120_v13  ;;  %v1097_v4 = vmul.f32 %v1069_v11, %v3133_v60  ;;  %v783_v13 = vmul.f32 %v4213_v22, %v4212_v20  ;;  %v1096_v51 = vmul.f32 %v1073_v23, %v3094_v8  ;;  %v4214_v62 = vld [vmem:[#allocation13_spill] sm:$0xff] }
 0x1cb   : > { %v3449_v34 = vpop.permute.xlu1 %1402  ;;  %v3451_v15 = vpop.permute.xlu0 %1410 }
 0x1cc   : > { %1546 = vrot.lane.b32.xlu0 %v3447_v2, %s2459_s20  ;;  %1651 = vrot.lane.b32.xlu1 %v3430_v36, %s2461_s22 }
 0x1cf   : > { %v3457_v35 = vpop.permute.xlu1 %1418  ;;  %v3459_v37 = vpop.permute.xlu0 %1426 }
 0x1d0   : > { %1643 = vrot.lane.b32.xlu0 %v3413_v46, %s2461_s22  ;;  %1667 = vrot.lane.b32.xlu1 %v3447_v2, %s2461_s22 }
 0x1d3   : > { %v918_v6 = vpop.permute.xlu1 %917  ;;  %v818_v3 = vpop.permute.xlu0 %817 }
 0x1d4   : > { %1659 = vrot.lane.b32.xlu0 %v3436_v1, %s2461_s22  ;;  %v825_v38 = vsel %vm821_vm2, %v3397_v55, %v818_v3  ;;  %v837_v26 = vsel %vm821_vm2, %v818_v3, %v3372_v9  ;;  %1169 = vrot.lane.b32.xlu1 %v1095_v33, %s2459_s20  ;;  %v1135_v3 = vmul.f32 %v4214_v62, %v1094_v10  ;;  %v4218_v1 = vld [vmem:[#allocation31_spill] sm:$0xff] }
 0x1d5   : > { %v850_v63 = vmul.f32 %v837_v26, %v3085_v59  ;;  %v853_v31 = vmul.f32 %v825_v38, %v3088_v21  ;;  %v4215_v26 = vld [vmem:[#allocation11_spill] sm:$0xff] }
 0x1d7   : > { %v891_v17 = vmul.f32 %v4211_v29, %v850_v63  ;;  %v934_v50 = vpop.permute.xlu1 %933  ;;  %v926_v32 = vpop.permute.xlu0 %925  ;;  %v894_v11 = vmul.f32 %v4211_v29, %v853_v31 }
 0x1d8   : > { %1161 = vrot.lane.b32.xlu0 %v1094_v10, %s2459_s20  ;;  %v951_v61 = vsel %vm943_vm1, %v926_v32, %v934_v50  ;;  %v955_v54 = vsel %vm943_vm1, %v918_v6, %v926_v32  ;;  %1185 = vrot.lane.b32.xlu1 %v1097_v4, %s2459_s20 }
 0x1d9   : > { %v972_v14 = vmul.f32 %v955_v54, %v3046_v48  ;;  %v973_v60 = vmul.f32 %v951_v61, %v3050_v41  ;;  %v907_v38 = vadd.f32 %v891_v17, %v783_v13  ;;  %v4216_v13 = vld [vmem:[#allocation33_spill] sm:$0xff] }
 0x1db   : > { %v1013_v63 = vmul.f32 %v4215_v26, %v972_v14  ;;  %v802_v2 = vpop.permute.xlu1 %801  ;;  %v942_v32 = vpop.permute.xlu0 %941 }
 0x1dc   : > { %v829_v20 = vsel %vm821_vm2, %v802_v2, %v3397_v55  ;;  %v833_v54 = vsel %vm821_vm2, %v3372_v9, %v802_v2  ;;  %1177 = vrot.lane.b32.xlu0 %v1096_v51, %s2459_s20  ;;  %v947_v8 = vsel %vm943_vm1, %v934_v50, %v942_v32  ;;  %v959_v31 = vsel %vm943_vm1, %v942_v32, %v918_v6  ;;  %v4217_v2 = vld [vmem:[#allocation29_spill] sm:$0xff] }
 0x1dd   : > { %v1029_v23 = vadd.f32 %v1013_v63, %v907_v38  ;;  %v851_v17 = vmul.f32 %v833_v54, %v3053_v39  ;;  %v852_v61 = vmul.f32 %v829_v20, %v3056_v5  ;;  %1289 = vrot.lane.b32.xlu1 %v1095_v33, %s2461_s22  ;;  %v974_v55 = vmul.f32 %v947_v8, %v3064_v49 }
 0x1de   : > { %v786_v9 = vmul.f32 %v4213_v22, %v4216_v13  ;;  %v785_v14 = vmul.f32 %v4213_v22, %v4217_v2  ;;  %v975_v50 = vmul.f32 %v959_v31, %v3067_v25  ;;  %v784_v6 = vmul.f32 %v4213_v22, %v4218_v1 }
 0x1df   : > { %v892_v38 = vmul.f32 %v4211_v29, %v851_v17  ;;  %v893_v63 = vmul.f32 %v4211_v29, %v852_v61  ;;  %v3526_v32 = vadd.f32 %v1135_v3, %v1029_v23  ;;  %v1436_v20 = vsel %vm1428_vm4, %v3451_v15, %v3457_v35 }
 0x1e0   : > { %v910_v54 = vadd.f32 %v894_v11, %v786_v9  ;;  %v1016_v8 = vmul.f32 %v4215_v26, %v975_v50  ;;  %1281 = vrot.lane.b32.xlu0 %v1094_v10, %s2461_s22  ;;  %v1014_v31 = vmul.f32 %v4215_v26, %v973_v60  ;;  %v1015_v22 = vmul.f32 %v4215_v26, %v974_v55  ;;  %v1762_v55 = vld [vmem:[%s4125_s4 + $0x10] sm:$0xff] }
 0x1e1   : > { %v908_v13 = vadd.f32 %v892_v38, %v784_v6  ;;  %v909_v1 = vadd.f32 %v893_v63, %v785_v14  ;;  %1305 = vrot.lane.b32.xlu1 %v1097_v4, %s2461_s22  ;;  %v1136_v29 = vmul.f32 %v4214_v62, %v1095_v33  ;;  %v1137_v3 = vmul.f32 %v4214_v62, %v1096_v51  ;;  %v4219_v14 = vld [vmem:[#allocation20_spill] sm:$0xff] }
 0x1e2   : > { %v1138_v23 = vmul.f32 %v4214_v62, %v1097_v4  ;;  %v1032_v17 = vadd.f32 %v1016_v8, %v910_v54  ;;  %v1440_v10 = vsel %vm1428_vm4, %v3449_v34, %v3451_v15  ;;  %v3545_v60 = vmul.f32 %v1436_v20, %v3169_v47  ;;  %v2249_v20 = vld [vmem:[%s4124_s3 + $0x100] sm:$0xff] }
 0x1e3   : > { %v1030_v11 = vadd.f32 %v1014_v31, %v908_v13  ;;  %v1031_v61 = vadd.f32 %v1015_v22, %v909_v1  ;;  %v1444_v33 = vsel %vm1428_vm4, %v3459_v37, %v3449_v34  ;;  %v3561_v47 = vmul.f32 %v1440_v10, %v3181_v18 }
 0x1e4   : > { %1297 = vrot.lane.b32.xlu0 %v1096_v51, %s2461_s22  ;;  %v3552_v26 = vadd.f32 %v1138_v23, %v1032_v17  ;;  %v1432_v62 = vsel %vm1428_vm4, %v3457_v35, %v3459_v37  ;;  %v3568_v34 = vmul.f32 %v1444_v33, %v3187_v16 }
 0x1e5   : > { %1532 = vrot.lane.b32.xlu1 %v3545_v60, %s2459_s20  ;;  %v3556_v4 = vadd.f32 %v1136_v29, %v1030_v11  ;;  %v3558_v15 = vadd.f32 %v1137_v3, %v1031_v61  ;;  %v3575_v51 = vmul.f32 %v1432_v62, %v3204_v57  ;;  %v4220_v62 = vld [vmem:[#allocation24_spill] sm:$0xff] }
 0x1e8   : > { %1524 = vrot.lane.b32.xlu0 %v3561_v47, %s2459_s20 }
 0x1e9   : > { %1548 = vrot.lane.b32.xlu1 %v3568_v34, %s2459_s20 }
 0x1ec   : > { %1540 = vrot.lane.b32.xlu0 %v3575_v51, %s2459_s20  ;;  %s2398_s20 = sshll.u32 %s2462_s21, 4  ;;  %s2399_s20 = int_to_ptr.vmem [resolvable:$false] %s2398_s20 }
 0x1ed   : > { %1653 = vrot.lane.b32.xlu1 %v3545_v60, %s2461_s22  ;;  %v1164_v18 = vpop.permute.xlu1 %1163  ;;  %s2400_s23 = scalar_lea.vmem %s2399_s20, 2048  ;;  %p2401_p2 = scmp.lt.s32.totalorder %s4071_s13, %s2399_s20 }
 0x1ee   : > { %p2402_p3 = scmp.lt.s32.totalorder %s2400_s23, %s2394_s19 }
 0x1f0   : > { %1645 = vrot.lane.b32.xlu0 %v3561_v47, %s2461_s22  ;;  %p2403_p4 = por %p2402_p3, %p2401_p2 }
 0x1f1   : > { %1669 = vrot.lane.b32.xlu1 %v3568_v34, %s2461_s22  ;;  %v1180_v16 = vpop.permute.xlu1 %1179  ;;  %v1156_v35 = vpop.permute.xlu0 %1155 }
 0x1f2   : > { %v1195_v37 = vsel %vm821_vm2, %v1156_v35, %v1164_v18  ;;  %v1199_v57 = vsel %vm821_vm2, %v1180_v16, %v1156_v35  ;;  %p2404_p5 = pnand %p2403_p4, %p2397_p1 }
 0x1f3   : > { %v1203_v9 = vmul.f32 %v1199_v57, %v3085_v59  ;;  %v1204_v2 = vmul.f32 %v1195_v37, %v3053_v39  ;;  %v1760_v57 = vld [vmem:[%s4125_s4] sm:$0xff] }
 0x1f4   : > { %1661 = vrot.lane.b32.xlu0 %v3575_v51, %s2461_s22 }
 0x1f5   : > { %v1243_v50 = vmul.f32 %v4219_v14, %v1203_v9  ;;  %v1244_v6 = vmul.f32 %v4219_v14, %v1204_v2  ;;  %1776 = vperm.xlu1 %2329, %v1762_v55   ;;  %v1284_v38 = vpop.permute.xlu1 %1283  ;;  %v1172_v63 = vpop.permute.xlu0 %1171 }
 0x1f6   : > { %v1187_v54 = vsel %vm821_vm2, %v1172_v63, %v1180_v16  ;;  %v1191_v8 = vsel %vm821_vm2, %v1164_v18, %v1172_v63 }
 0x1f7   : > { %v1259_v31 = vadd.f32 %v1243_v50, %v3158_v28  ;;  %v1260_v13 = vadd.f32 %v1244_v6, %v3150_v43  ;;  %v1205_v1 = vmul.f32 %v1191_v8, %v3056_v5  ;;  %v1206_v22 = vmul.f32 %v1187_v54, %v3088_v21  ;;  %v4221_v50 = vld [vmem:[#allocation38_spill] sm:$0xff]  ;;  %v1761_v54 = vld [vmem:[%s4125_s4 + $0x8] sm:$0xff] }
 0x1f8   : > { %1710 = vperm.xlu0 %2328, %v2249_v20   ;;  %v4222_v8 = vld [vmem:[#allocation30_spill] sm:$0xff] }
 0x1f9   : > { %v1245_v29 = vmul.f32 %v4219_v14, %v1205_v1  ;;  %v1246_v3 = vmul.f32 %v4219_v14, %v1206_v22  ;;  %1647 = vrot.lane.b32.xlu1 %v3184_v19, %s2461_s22  ;;  %v1300_v23 = vpop.permute.xlu1 %1299  ;;  %v1276_v17 = vpop.permute.xlu0 %1275  ;;  %v1487_v1 = vmul.f32 %v4222_v8, %v3184_v19  ;;  %v4223_v19 = vld [vmem:[#allocation35_spill] sm:$0xff] }
 0x1fa   : > { %v1315_v10 = vsel %vm943_vm1, %v1276_v17, %v1284_v38  ;;  %v1319_v43 = vsel %vm943_vm1, %v1300_v23, %v1276_v17 }
 0x1fb   : > { %v1261_v28 = vadd.f32 %v1245_v29, %v3152_v7  ;;  %v1262_v11 = vadd.f32 %v1246_v3, %v3160_v53  ;;  %v1323_v61 = vmul.f32 %v1315_v10, %v3046_v48  ;;  %v1326_v33 = vmul.f32 %v1319_v43, %v3067_v25  ;;  %v1931_v3 = vld [vmem:[%s4127_s6 + $0x8] sm:$0xff] }
 0x1fc   : > { %1639 = vrot.lane.b32.xlu0 %v3201_v0, %s2461_s22 }
 0x1fd   : > { %v1364_v18 = vmul.f32 %v4220_v62, %v1323_v61  ;;  %v1367_v16 = vmul.f32 %v4220_v62, %v1326_v33  ;;  %1663 = vrot.lane.b32.xlu1 %v3207_v24, %s2461_s22  ;;  %v1527_v35 = vpop.permute.xlu1 %1526  ;;  %v1292_v37 = vpop.permute.xlu0 %1291 }
 0x1fe   : > { %v1307_v7 = vsel %vm943_vm1, %v1292_v37, %v1300_v23  ;;  %v1311_v53 = vsel %vm943_vm1, %v1284_v38, %v1292_v37 }
 0x1ff   : > { %v1380_v55 = vadd.f32 %v1364_v18, %v1259_v31  ;;  %v1383_v9 = vadd.f32 %v1367_v16, %v1262_v11  ;;  %v1324_v2 = vmul.f32 %v1311_v53, %v3050_v41  ;;  %v1325_v14 = vmul.f32 %v1307_v7, %v3064_v49  ;;  %v1930_v18 = vld [vmem:[%s4127_s6] sm:$0xff] }
 0x200   : > { %1655 = vrot.lane.b32.xlu0 %v4221_v50, %s2461_s22  ;;  %v1486_v31 = vmul.f32 %v4222_v8, %v3201_v0 }
 0x201   : > { %v1365_v6 = vmul.f32 %v4220_v62, %v1324_v2  ;;  %v1366_v63 = vmul.f32 %v4220_v62, %v1325_v14  ;;  %1766 = vperm.xlu1 %2329, %v1760_v57   ;;  %v1543_v20 = vpop.permute.xlu1 %1542  ;;  %v1519_v38 = vpop.permute.xlu0 %1518 }
 0x202   : > { %v1558_v22 = vsel %vm821_vm2, %v1519_v38, %v1527_v35  ;;  %v1562_v29 = vsel %vm821_vm2, %v1543_v20, %v1519_v38  ;;  %v1502_v11 = vadd.f32 %v1486_v31, %v1380_v55 }
 0x203   : > { %v1381_v23 = vadd.f32 %v1365_v6, %v1260_v13  ;;  %v1382_v17 = vadd.f32 %v1366_v63, %v1261_v28  ;;  %v1566_v10 = vmul.f32 %v1562_v29, %v3085_v59  ;;  %v1567_v43 = vmul.f32 %v1558_v22, %v3053_v39 }
 0x204   : > { %1771 = vperm.xlu0 %2328, %v1761_v54   ;;  %v1488_v13 = vmul.f32 %v4222_v8, %v4221_v50  ;;  %v1489_v28 = vmul.f32 %v4222_v8, %v3207_v24 }
 0x205   : > { %v1503_v0 = vadd.f32 %v1487_v1, %v1381_v23  ;;  %v1607_v61 = vmul.f32 %v4223_v19, %v1566_v10  ;;  %v1608_v33 = vmul.f32 %v4223_v19, %v1567_v43  ;;  %1939 = vperm.xlu1 %2329, %v1931_v3   ;;  %v1535_v62 = vpop.permute.xlu0 %1534  ;;  %v1166_v16 = vpop.permute.xlu1 %1165  ;;  %v4224_v1 = vld [vmem:[#allocation17_spill] sm:$0xff] }
 0x206   : > { %v1550_v37 = vsel %vm821_vm2, %v1535_v62, %v1543_v20  ;;  %v1554_v7 = vsel %vm821_vm2, %v1527_v35, %v1535_v62  ;;  %v1504_v14 = vadd.f32 %v1488_v13, %v1382_v17  ;;  %v1505_v50 = vadd.f32 %v1489_v28, %v1383_v9 }
 0x207   : > { %v3669_v53 = vadd.f32 %v1607_v61, %v1502_v11  ;;  %v3671_v57 = vadd.f32 %v1608_v33, %v1503_v0  ;;  %v1568_v55 = vmul.f32 %v1554_v7, %v3056_v5  ;;  %v1569_v2 = vmul.f32 %v1550_v37, %v3088_v21  ;;  %v4225_v7 = vld [vmem:[#allocation21_spill] sm:$0xff] }
 0x208   : > { %1934 = vperm.xlu0 %2328, %v1930_v18  }
 0x209   : > { %v1609_v24 = vmul.f32 %v4223_v19, %v1568_v55  ;;  %v1610_v6 = vmul.f32 %v4223_v19, %v1569_v2 }
 0x20a   : > { %v1158_v63 = vpop.permute.xlu0 %1157  ;;  %v1182_v35 = vpop.permute.xlu1 %1181 }
 0x20b   : > { %v3677_v20 = vadd.f32 %v1609_v24, %v1504_v14  ;;  %v3679_v38 = vadd.f32 %v1610_v6, %v1505_v50  ;;  %v1196_v54 = vsel %vm821_vm2, %v1158_v63, %v1166_v16  ;;  %v1200_v8 = vsel %vm821_vm2, %v1182_v35, %v1158_v63 }
 0x20c   : > { %v1208_v31 = vmul.f32 %v1196_v54, %v3053_v39  ;;  %v1207_v9 = vmul.f32 %v1200_v8, %v3085_v59  ;;  %v4227_v8 = vld [vmem:[#allocation41_spill] sm:$0xff] }
 0x20e   : > { %v1248_v22 = vmul.f32 %v4224_v1, %v1208_v31  ;;  %v1174_v29 = vpop.permute.xlu0 %1173  ;;  %v1247_v3 = vmul.f32 %v4224_v1, %v1207_v9  ;;  %v1286_v23 = vpop.permute.xlu1 %1285 }
 0x20f   : > { %v1188_v17 = vsel %vm821_vm2, %v1174_v29, %v1182_v35  ;;  %v1192_v10 = vsel %vm821_vm2, %v1166_v16, %v1174_v29 }
 0x210   : > { %v1264_v43 = vadd.f32 %v1248_v22, %v3286_v30  ;;  %v1209_v0 = vmul.f32 %v1192_v10, %v3056_v5  ;;  %v1210_v11 = vmul.f32 %v1188_v17, %v3088_v21  ;;  %v1263_v19 = vadd.f32 %v1247_v3, %v3284_v52  ;;  %v4228_v17 = vld [vmem:[#allocation39_spill] sm:$0xff]  ;;  %v4229_v10 = vld [vmem:[#allocation40_spill] sm:$0xff] }
 0x212   : > { %v1249_v61 = vmul.f32 %v4224_v1, %v1209_v0  ;;  %v1250_v33 = vmul.f32 %v4224_v1, %v1210_v11  ;;  %v1278_v62 = vpop.permute.xlu0 %1277  ;;  %v1302_v18 = vpop.permute.xlu1 %1301 }
 0x213   : > { %v1316_v13 = vsel %vm943_vm1, %v1278_v62, %v1286_v23  ;;  %v1320_v30 = vsel %vm943_vm1, %v1302_v18, %v1278_v62 }
 0x214   : > { %v1265_v28 = vadd.f32 %v1249_v61, %v3307_v56  ;;  %v1266_v16 = vadd.f32 %v1250_v33, %v3309_v45  ;;  %v1327_v37 = vmul.f32 %v1316_v13, %v3046_v48  ;;  %v1330_v52 = vmul.f32 %v1320_v30, %v3067_v25  ;;  %v4226_v45 = vld [vmem:[#allocation25_spill] sm:$0xff] }
 0x215   : > { %v1490_v6 = vmul.f32 %v4226_v45, %v3301_v42  ;;  %v1493_v31 = vmul.f32 %v4226_v45, %v4227_v8  ;;  %v1492_v42 = vmul.f32 %v4226_v45, %v4229_v10 }
 0x216   : > { %v1368_v55 = vmul.f32 %v4225_v7, %v1327_v37  ;;  %v1294_v2 = vpop.permute.xlu0 %1293  ;;  %v1371_v14 = vmul.f32 %v4225_v7, %v1330_v52  ;;  %v1521_v50 = vpop.permute.xlu1 %1520  ;;  %v4230_v37 = vld [vmem:[#allocation32_spill] sm:$0xff] }
 0x217   : > { %v1308_v24 = vsel %vm943_vm1, %v1294_v2, %v1302_v18  ;;  %v1312_v56 = vsel %vm943_vm1, %v1286_v23, %v1294_v2  ;;  %v1491_v23 = vmul.f32 %v4226_v45, %v4228_v17 }
 0x218   : > { %v1384_v63 = vadd.f32 %v1368_v55, %v1263_v19  ;;  %v1328_v35 = vmul.f32 %v1312_v56, %v3050_v41  ;;  %v1329_v54 = vmul.f32 %v1308_v24, %v3064_v49  ;;  %v1387_v9 = vadd.f32 %v1371_v14, %v1266_v16 }
 0x21a   : > { %v1369_v1 = vmul.f32 %v4225_v7, %v1328_v35  ;;  %v1370_v22 = vmul.f32 %v4225_v7, %v1329_v54  ;;  %v1529_v29 = vpop.permute.xlu0 %1528  ;;  %v1506_v3 = vadd.f32 %v1490_v6, %v1384_v63  ;;  %v1537_v0 = vpop.permute.xlu1 %1536  ;;  %v1509_v19 = vadd.f32 %v1493_v31, %v1387_v9 }
 0x21b   : > { %v1559_v11 = vsel %vm821_vm2, %v1521_v50, %v1529_v29  ;;  %v1555_v62 = vsel %vm821_vm2, %v1529_v29, %v1537_v0  ;;  %v4231_v29 = vld [vmem:[#allocation36_spill] sm:$0xff] }
 0x21c   : > { %v1385_v61 = vadd.f32 %v1369_v1, %v1264_v43  ;;  %v1386_v33 = vadd.f32 %v1370_v22, %v1265_v28  ;;  %v1571_v18 = vmul.f32 %v1559_v11, %v3053_v39  ;;  %v1572_v13 = vmul.f32 %v1555_v62, %v3056_v5 }
 0x21e   : > { %v1507_v16 = vadd.f32 %v1491_v23, %v1385_v61  ;;  %v1508_v30 = vadd.f32 %v1492_v42, %v1386_v33  ;;  %v1612_v52 = vmul.f32 %v4230_v37, %v1571_v18  ;;  %v1545_v7 = vpop.permute.xlu0 %1544  ;;  %v1613_v55 = vmul.f32 %v4230_v37, %v1572_v13  ;;  %v1650_v2 = vpop.permute.xlu1 %1649 }
 0x21f   : > { %v1551_v14 = vsel %vm821_vm2, %v1537_v0, %v1545_v7  ;;  %v1563_v43 = vsel %vm821_vm2, %v1545_v7, %v1521_v50 }
 0x220   : > { %v1628_v28 = vadd.f32 %v1612_v52, %v1507_v16  ;;  %v1570_v24 = vmul.f32 %v1563_v43, %v3085_v59  ;;  %v1573_v56 = vmul.f32 %v1551_v14, %v3088_v21  ;;  %v1629_v45 = vadd.f32 %v1613_v55, %v1508_v30  ;;  %v4232_v14 = vld [vmem:[#allocation15_spill] sm:$0xff] }
 0x222   : > { %v1611_v6 = vmul.f32 %v4230_v37, %v1570_v24  ;;  %v1614_v63 = vmul.f32 %v4230_v37, %v1573_v56  ;;  %v1642_v35 = vpop.permute.xlu0 %1641  ;;  %v1666_v54 = vpop.permute.xlu1 %1665 }
 0x223   : > { %v1680_v8 = vsel %vm943_vm1, %v1642_v35, %v1650_v2  ;;  %v1684_v50 = vsel %vm943_vm1, %v1666_v54, %v1642_v35 }
 0x224   : > { %v1627_v31 = vadd.f32 %v1611_v6, %v1506_v3  ;;  %v1630_v9 = vadd.f32 %v1614_v63, %v1509_v19  ;;  %v1691_v1 = vmul.f32 %v1680_v8, %v3046_v48  ;;  %v1694_v22 = vmul.f32 %v1684_v50, %v3067_v25 }
 0x226   : > { %v1732_v17 = vmul.f32 %v4231_v29, %v1691_v1  ;;  %v1658_v23 = vpop.permute.xlu0 %1657  ;;  %v1735_v10 = vmul.f32 %v4231_v29, %v1694_v22  ;;  %v1160_v42 = vpop.permute.xlu1 %1159 }
 0x227   : > { %v1672_v0 = vsel %vm943_vm1, %v1658_v23, %v1666_v54  ;;  %v1676_v3 = vsel %vm943_vm1, %v1650_v2, %v1658_v23 }
 0x228   : > { %v3753_v11 = vadd.f32 %v1732_v17, %v1627_v31  ;;  %v1692_v19 = vmul.f32 %v1676_v3, %v3050_v41  ;;  %v1693_v61 = vmul.f32 %v1672_v0, %v3064_v49  ;;  %v3757_v33 = vadd.f32 %v1735_v10, %v1630_v9  ;;  %v4233_v10 = vld [vmem:[#allocation18_spill] sm:$0xff] }
 0x22a   : > { %v1733_v62 = vmul.f32 %v4231_v29, %v1692_v19  ;;  %v1734_v18 = vmul.f32 %v4231_v29, %v1693_v61  ;;  %v1168_v13 = vpop.permute.xlu0 %1167  ;;  %v1176_v16 = vpop.permute.xlu1 %1175 }
 0x22b   : > { %v1197_v30 = vsel %vm821_vm2, %v1160_v42, %v1168_v13  ;;  %v1193_v7 = vsel %vm821_vm2, %v1168_v13, %v1176_v16 }
 0x22c   : > { %v3763_v37 = vadd.f32 %v1733_v62, %v1628_v28  ;;  %v3765_v52 = vadd.f32 %v1734_v18, %v1629_v45  ;;  %v1212_v55 = vmul.f32 %v1197_v30, %v3053_v39  ;;  %v1213_v2 = vmul.f32 %v1193_v7, %v3056_v5 }
 0x22e   : > { %v1252_v43 = vmul.f32 %v4232_v14, %v1212_v55  ;;  %v1184_v24 = vpop.permute.xlu0 %1183  ;;  %v1253_v56 = vmul.f32 %v4232_v14, %v1213_v2  ;;  %v1280_v6 = vpop.permute.xlu1 %1279 }
 0x22f   : > { %v1189_v63 = vsel %vm821_vm2, %v1176_v16, %v1184_v24  ;;  %v1201_v28 = vsel %vm821_vm2, %v1184_v24, %v1160_v42  ;;  %v4235_v24 = vld [vmem:[#allocation42_spill] sm:$0xff] }
 0x230   : > { %v1268_v45 = vadd.f32 %v1252_v43, %v3417_v58  ;;  %v1211_v35 = vmul.f32 %v1201_v28, %v3085_v59  ;;  %v1214_v54 = vmul.f32 %v1189_v63, %v3088_v21  ;;  %v1269_v8 = vadd.f32 %v1253_v56, %v3438_v27 }
 0x232   : > { %v1251_v31 = vmul.f32 %v4232_v14, %v1211_v35  ;;  %v1254_v9 = vmul.f32 %v4232_v14, %v1214_v54  ;;  %v1288_v50 = vpop.permute.xlu0 %1287  ;;  %v1296_v1 = vpop.permute.xlu1 %1295 }
 0x233   : > { %v1317_v22 = vsel %vm943_vm1, %v1280_v6, %v1288_v50  ;;  %v1313_v58 = vsel %vm943_vm1, %v1288_v50, %v1296_v1 }
 0x234   : > { %v1267_v29 = vadd.f32 %v1251_v31, %v3419_v44  ;;  %v1270_v17 = vadd.f32 %v1254_v9, %v3440_v40  ;;  %v1331_v23 = vmul.f32 %v1317_v22, %v3046_v48  ;;  %v1332_v27 = vmul.f32 %v1313_v58, %v3050_v41  ;;  %v4234_v40 = vld [vmem:[#allocation22_spill] sm:$0xff] }
 0x235   : > { %v1494_v62 = vmul.f32 %v4234_v40, %v3413_v46  ;;  %v1495_v30 = vmul.f32 %v4234_v40, %v3430_v36  ;;  %v1496_v56 = vmul.f32 %v4234_v40, %v4235_v24 }
 0x236   : > { %v1372_v42 = vmul.f32 %v4233_v10, %v1331_v23  ;;  %v1304_v0 = vpop.permute.xlu0 %1303  ;;  %v1373_v3 = vmul.f32 %v4233_v10, %v1332_v27  ;;  %v1523_v19 = vpop.permute.xlu1 %1522 }
 0x237   : > { %v1309_v61 = vsel %vm943_vm1, %v1296_v1, %v1304_v0  ;;  %v1321_v44 = vsel %vm943_vm1, %v1304_v0, %v1280_v6  ;;  %v4236_v6 = vld [vmem:[#allocation43_spill] sm:$0xff] }
 0x238   : > { %v1388_v18 = vadd.f32 %v1372_v42, %v1267_v29  ;;  %v1333_v13 = vmul.f32 %v1309_v61, %v3064_v49  ;;  %v1334_v16 = vmul.f32 %v1321_v44, %v3067_v25  ;;  %v1389_v7 = vadd.f32 %v1373_v3, %v1268_v45  ;;  %v4237_v1 = vld [vmem:[#allocation27_spill] sm:$0xff] }
 0x239   : > { %v1497_v46 = vmul.f32 %v4234_v40, %v4236_v6 }
 0x23a   : > { %v1374_v55 = vmul.f32 %v4233_v10, %v1333_v13  ;;  %v1375_v2 = vmul.f32 %v4233_v10, %v1334_v16  ;;  %v1531_v14 = vpop.permute.xlu0 %1530  ;;  %v1510_v43 = vadd.f32 %v1494_v62, %v1388_v18  ;;  %v1539_v63 = vpop.permute.xlu1 %1538  ;;  %v1511_v28 = vadd.f32 %v1495_v30, %v1389_v7 }
 0x23b   : > { %v1560_v35 = vsel %vm821_vm2, %v1523_v19, %v1531_v14  ;;  %v1556_v45 = vsel %vm821_vm2, %v1531_v14, %v1539_v63 }
 0x23c   : > { %v1390_v54 = vadd.f32 %v1374_v55, %v1269_v8  ;;  %v1391_v36 = vadd.f32 %v1375_v2, %v1270_v17  ;;  %v1575_v31 = vmul.f32 %v1560_v35, %v3053_v39  ;;  %v1576_v9 = vmul.f32 %v1556_v45, %v3056_v5  ;;  %v4238_v55 = vld [vmem:[#allocation34_spill] sm:$0xff] }
 0x23e   : > { %v1512_v50 = vadd.f32 %v1496_v56, %v1390_v54  ;;  %v1616_v22 = vmul.f32 %v4237_v1, %v1575_v31  ;;  %v1513_v29 = vadd.f32 %v1497_v46, %v1391_v36  ;;  %v1547_v58 = vpop.permute.xlu0 %1546  ;;  %v1617_v23 = vmul.f32 %v4237_v1, %v1576_v9  ;;  %v1652_v27 = vpop.permute.xlu1 %1651 }
 0x23f   : > { %v1552_v10 = vsel %vm821_vm2, %v1539_v63, %v1547_v58  ;;  %v1564_v8 = vsel %vm821_vm2, %v1547_v58, %v1523_v19 }
 0x240   : > { %v1632_v17 = vadd.f32 %v1616_v22, %v1511_v28  ;;  %v1574_v42 = vmul.f32 %v1564_v8, %v3085_v59  ;;  %v1577_v0 = vmul.f32 %v1552_v10, %v3088_v21  ;;  %v1633_v3 = vadd.f32 %v1617_v23, %v1512_v50  ;;  %v4239_v23 = vld [vmem:[#allocation14_spill] sm:$0xff] }
 0x242   : > { %v1615_v61 = vmul.f32 %v4237_v1, %v1574_v42  ;;  %v1618_v44 = vmul.f32 %v4237_v1, %v1577_v0  ;;  %v1644_v40 = vpop.permute.xlu0 %1643  ;;  %v1668_v62 = vpop.permute.xlu1 %1667 }
 0x243   : > { %v1681_v18 = vsel %vm943_vm1, %v1644_v40, %v1652_v27  ;;  %v1685_v19 = vsel %vm943_vm1, %v1668_v62, %v1644_v40 }
 0x244   : > { %v1631_v13 = vadd.f32 %v1615_v61, %v1510_v43  ;;  %v1634_v16 = vadd.f32 %v1618_v44, %v1513_v29  ;;  %v1695_v30 = vmul.f32 %v1681_v18, %v3046_v48  ;;  %v1698_v7 = vmul.f32 %v1685_v19, %v3067_v25 }
 0x246   : > { %v1736_v2 = vmul.f32 %v4238_v55, %v1695_v30  ;;  %v1660_v14 = vpop.permute.xlu0 %1659  ;;  %v1739_v24 = vmul.f32 %v4238_v55, %v1698_v7  ;;  %v1170_v56 = vpop.permute.xlu1 %1169 }
 0x247   : > { %v1673_v6 = vsel %vm943_vm1, %v1660_v14, %v1668_v62  ;;  %v1677_v43 = vsel %vm943_vm1, %v1652_v27, %v1660_v14 }
 0x248   : > { %v3837_v46 = vadd.f32 %v1736_v2, %v1631_v13  ;;  %v1696_v63 = vmul.f32 %v1677_v43, %v3050_v41  ;;  %v1697_v28 = vmul.f32 %v1673_v6, %v3064_v49  ;;  %v3841_v35 = vadd.f32 %v1739_v24, %v1634_v16  ;;  %v4240_v2 = vld [vmem:[#allocation16_spill] sm:$0xff] }
 0x24a   : > { %v1737_v54 = vmul.f32 %v4238_v55, %v1696_v63  ;;  %v1738_v36 = vmul.f32 %v4238_v55, %v1697_v28  ;;  %v1162_v45 = vpop.permute.xlu0 %1161  ;;  %v1186_v31 = vpop.permute.xlu1 %1185 }
 0x24b   : > { %v1198_v9 = vsel %vm821_vm2, %v1162_v45, %v1170_v56  ;;  %v1202_v22 = vsel %vm821_vm2, %v1186_v31, %v1162_v45 }
 0x24c   : > { %v3847_v50 = vadd.f32 %v1737_v54, %v1632_v17  ;;  %v3849_v1 = vadd.f32 %v1738_v36, %v1633_v3  ;;  %v1216_v29 = vmul.f32 %v1198_v9, %v3053_v39  ;;  %v1215_v58 = vmul.f32 %v1202_v22, %v3085_v59 }
 0x24e   : > { %v1256_v27 = vmul.f32 %v4239_v23, %v1216_v29  ;;  %v1178_v10 = vpop.permute.xlu0 %1177  ;;  %v1255_v8 = vmul.f32 %v4239_v23, %v1215_v58 }
 0x24f   : > { %v1290_v42 = vpop.permute.xlu1 %1289  ;;  %v1190_v0 = vsel %vm821_vm2, %v1178_v10, %v1186_v31  ;;  %v1194_v17 = vsel %vm821_vm2, %v1170_v56, %v1178_v10 }
 0x250   : > { %v1272_v3 = vadd.f32 %v1256_v27, %v3556_v4  ;;  %v1217_v61 = vmul.f32 %v1194_v17, %v3056_v5  ;;  %v1218_v44 = vmul.f32 %v1190_v0, %v3088_v21  ;;  %v1271_v40 = vadd.f32 %v1255_v8, %v3526_v32 }
 0x252   : > { %v1257_v62 = vmul.f32 %v4239_v23, %v1217_v61  ;;  %v1258_v18 = vmul.f32 %v4239_v23, %v1218_v44  ;;  %v1282_v13 = vpop.permute.xlu0 %1281 }
 0x253   : > { %v1306_v16 = vpop.permute.xlu1 %1305  ;;  %v1318_v19 = vsel %vm943_vm1, %v1282_v13, %v1290_v42 }
 0x254   : > { %v1273_v30 = vadd.f32 %v1257_v62, %v3558_v15  ;;  %v1274_v7 = vadd.f32 %v1258_v18, %v3552_v26  ;;  %v1322_v4 = vsel %vm943_vm1, %v1306_v16, %v1282_v13  ;;  %v1335_v55 = vmul.f32 %v1318_v19, %v3046_v48  ;;  %v4241_v26 = vld [vmem:[#allocation19_spill] sm:$0xff] }
 0x255   : > { %v1338_v32 = vmul.f32 %v1322_v4, %v3067_v25  ;;  %v1498_v63 = vmul.f32 %v4241_v26, %v3561_v47  ;;  %v1501_v45 = vmul.f32 %v4241_v26, %v3568_v34  ;;  %v1499_v23 = vmul.f32 %v4241_v26, %v3545_v60 }
 0x256   : > { %v1376_v14 = vmul.f32 %v4240_v2, %v1335_v55  ;;  %v1298_v24 = vpop.permute.xlu0 %1297  ;;  %v1500_v47 = vmul.f32 %v4241_v26, %v3575_v51 }
 0x257   : > { %v1379_v56 = vmul.f32 %v4240_v2, %v1338_v32  ;;  %v1533_v6 = vpop.permute.xlu1 %1532  ;;  %v1310_v43 = vsel %vm943_vm1, %v1298_v24, %v1306_v16  ;;  %v1314_v15 = vsel %vm943_vm1, %v1290_v42, %v1298_v24 }
 0x258   : > { %v1392_v28 = vadd.f32 %v1376_v14, %v1271_v40  ;;  %v1336_v54 = vmul.f32 %v1314_v15, %v3050_v41  ;;  %v1337_v36 = vmul.f32 %v1310_v43, %v3064_v49  ;;  %v4242_v40 = vld [vmem:[#allocation23_spill] sm:$0xff] }
 0x259   : > { %v1395_v31 = vadd.f32 %v1379_v56, %v1274_v7 }
 0x25a   : > { %v1377_v9 = vmul.f32 %v4240_v2, %v1336_v54  ;;  %v1378_v22 = vmul.f32 %v4240_v2, %v1337_v36  ;;  %v1514_v29 = vadd.f32 %v1498_v63, %v1392_v28  ;;  %v1525_v58 = vpop.permute.xlu0 %1524 }
 0x25b   : > { %v1549_v27 = vpop.permute.xlu1 %1548  ;;  %v1561_v10 = vsel %vm821_vm2, %v1525_v58, %v1533_v6  ;;  %v1517_v8 = vadd.f32 %v1501_v45, %v1395_v31 }
 0x25c   : > { %v1393_v42 = vadd.f32 %v1377_v9, %v1272_v3  ;;  %v1394_v34 = vadd.f32 %v1378_v22, %v1273_v30  ;;  %v1565_v0 = vsel %vm821_vm2, %v1549_v27, %v1525_v58  ;;  %v1579_v17 = vmul.f32 %v1561_v10, %v3053_v39  ;;  %v4244_v9 = vld [vmem:[#allocation37_spill] sm:$0xff] }
 0x25d   : > { %v1578_v61 = vmul.f32 %v1565_v0, %v3085_v59 }
 0x25e   : > { %v1515_v44 = vadd.f32 %v1499_v23, %v1393_v42  ;;  %v1620_v60 = vmul.f32 %v4242_v40, %v1579_v17  ;;  %v1516_v62 = vadd.f32 %v1500_v47, %v1394_v34  ;;  %v1541_v18 = vpop.permute.xlu0 %1540  ;;  %v3936_v34 = vpop.f32.mrf.mxu1 }
 0x25f   : > { %v1619_v51 = vmul.f32 %v4242_v40, %v1578_v61  ;;  %v1654_v13 = vpop.permute.xlu1 %1653  ;;  %v1553_v16 = vsel %vm821_vm2, %v1541_v18, %v1549_v27  ;;  %v1557_v3 = vsel %vm821_vm2, %v1533_v6, %v1541_v18 }
 0x260   : > { %v1636_v19 = vadd.f32 %v1620_v60, %v1515_v44  ;;  %v1580_v30 = vmul.f32 %v1557_v3, %v3056_v5  ;;  %v1581_v39 = vmul.f32 %v1553_v16, %v3088_v21  ;;  %v4243_v21 = vld [vmem:[#allocation28_spill] sm:$0xff]  ;;  %v3957_v16 = vpop.f32.mrf.mxu1 }
 0x261   : > { %v1635_v59 = vadd.f32 %v1619_v51, %v1514_v29 }
 0x262   : > { %v1621_v7 = vmul.f32 %v4242_v40, %v1580_v30  ;;  %v1622_v4 = vmul.f32 %v4242_v40, %v1581_v39  ;;  %v1646_v55 = vpop.permute.xlu0 %1645 }
 0x263   : > { %v1670_v32 = vpop.permute.xlu1 %1669  ;;  %v1682_v2 = vsel %vm943_vm1, %v1646_v55, %v1654_v13 }
 0x264   : > { %v1637_v14 = vadd.f32 %v1621_v7, %v1516_v62  ;;  %v1638_v24 = vadd.f32 %v1622_v4, %v1517_v8  ;;  %v1686_v56 = vsel %vm943_vm1, %v1670_v32, %v1646_v55  ;;  %v1699_v6 = vmul.f32 %v1682_v2, %v3046_v48 }
 0x265   : > { %v1702_v5 = vmul.f32 %v1686_v56, %v3067_v25 }
 0x266   : > { %v1740_v43 = vmul.f32 %v4243_v21, %v1699_v6  ;;  %v1662_v15 = vpop.permute.xlu0 %1661 }
 0x267   : > { %v1743_v26 = vmul.f32 %v4243_v21, %v1702_v5  ;;  %v1674_v63 = vsel %vm943_vm1, %v1662_v15, %v1670_v32  ;;  %v1678_v28 = vsel %vm943_vm1, %v1654_v13, %v1662_v15 }
 0x268   : > { %v1756_v54 = vadd.f32 %v1740_v43, %v1635_v59  ;;  %v1700_v36 = vmul.f32 %v1678_v28, %v3050_v41  ;;  %v1701_v45 = vmul.f32 %v1674_v63, %v3064_v49 }
 0x269   : > { %v1759_v31 = vadd.f32 %v1743_v26, %v1638_v24 }
 0x26a   : > { %v3924_v22 = vadd.f32 %v4244_v9, %v1756_v54  ;;  %v1741_v29 = vmul.f32 %v4243_v21, %v1700_v36  ;;  %v1742_v58 = vmul.f32 %v4243_v21, %v1701_v45  ;;  %v3979_v54 = vpop.f32.mrf.mxu0 }
 0x26b   : > { %v3929_v23 = vadd.f32 %v4244_v9, %v1759_v31 }
 0x26c   : > { %v2265_v47 = vmul.f32 -1.442695, %v3924_v22  ;;  %v1757_v27 = vadd.f32 %v1741_v29, %v1636_v19  ;;  %v1758_v10 = vadd.f32 %v1742_v58, %v1637_v14  ;;  %v3961_v19 = vpop.f32.mrf.mxu1 }
 0x26d   : > { %v2268_v8 = vmul.f32 -1.442695, %v3929_v23 }
 0x26e   : > { %2330 = vpow2.f32 %v2265_v47  ;;  %v3934_v42 = vadd.f32 %v4244_v9, %v1758_v10  ;;  %v3952_v62 = vadd.f32 %v4244_v9, %v1757_v27  ;;  %v3969_v24 = vpop.f32.mrf.mxu1 }
 0x26f   : > { %2332 = vpow2.f32 %v2268_v8  ;;  %v3994_v8 = vpop.f32.mrf.mxu0 }
 0x270   : > { %v2267_v0 = vmul.f32 -1.442695, %v3934_v42  ;;  %v1777_v17 = vpop.permute.xlu1 %1776  ;;  %v3983_v12 = vpop.f32.mrf.mxu1 }
 0x271   : > { %v3940_v61 = vadd.f32 %v1777_v17, %v3837_v46  ;;  %v3943_v44 = vadd.f32 %v1777_v17, %v3847_v50  ;;  %v3946_v40 = vadd.f32 %v1777_v17, %v3849_v1  ;;  %v3949_v60 = vadd.f32 %v1777_v17, %v3841_v35 }
 0x272   : > { %2334 = vpow2.f32 %v2267_v0  ;;  %v2266_v35 = vmul.f32 -1.442695, %v3952_v62 }
 0x273   : > { %v2261_v18 = vmul.f32 -1.442695, %v3940_v61  ;;  %v2262_v51 = vmul.f32 -1.442695, %v3943_v44  ;;  %v2263_v46 = vmul.f32 -1.442695, %v3946_v40  ;;  %v1711_v13 = vpop.permute.xlu0 %1710 }
 0x274   : > { %v2264_v50 = vmul.f32 -1.442695, %v3949_v60  ;;  %v1648_v1 = vpop.permute.xlu1 %1647 }
 0x275   : > { %2336 = vpow2.f32 %v2261_v18 }
 0x276   : > { %2338 = vpow2.f32 %v2262_v51  ;;  %v646_v51 = vpop.f32.mrf.mxu1 }
 0x277   : > { %2340 = vpow2.f32 %v2263_v46  ;;  %v1640_v3 = vpop.permute.xlu0 %1639 }
 0x278   : > { %2342 = vpow2.f32 %v2264_v50  ;;  %v1664_v30 = vpop.permute.xlu1 %1663  ;;  %v1679_v39 = vsel %vm943_vm1, %v1640_v3, %v1648_v1 }
 0x279   : > { %v1683_v59 = vsel %vm943_vm1, %v1664_v30, %v1640_v3  ;;  %v1687_v7 = vmul.f32 %v1679_v39, %v3046_v48  ;;  %2344 = vpow2.f32 %v2266_v35  ;;  %v650_v35 = vpop.f32.mrf.mxu1  ;;  %v4009_v39 = vpop.f32.mrf.mxu0 }
 0x27a   : > { %v1690_v4 = vmul.f32 %v1683_v59, %v3067_v25 }
 0x27b   : > { %v2331_v55 = vpop.eup %2330  ;;  %v1728_v32 = vmul.f32 %v1711_v13, %v1687_v7  ;;  %v1656_v2 = vpop.permute.xlu0 %1655 }
 0x27c   : > { %v2333_v14 = vpop.eup %2332  ;;  %v1860_v56 = vadd.f32 1.0, %v2331_v55  ;;  %v1731_v6 = vmul.f32 %v1711_v13, %v1690_v4  ;;  %v1671_v5 = vsel %vm943_vm1, %v1656_v2, %v1664_v30  ;;  %v1675_v21 = vsel %vm943_vm1, %v1648_v1, %v1656_v2  ;;  %v1767_v63 = vpop.permute.xlu1 %1766 }
 0x27d   : > { %v1744_v43 = vadd.f32 %v1728_v32, %v3669_v53  ;;  %v1688_v48 = vmul.f32 %v1675_v21, %v3050_v41  ;;  %v1689_v25 = vmul.f32 %v1671_v5, %v3064_v49  ;;  %v1863_v15 = vadd.f32 1.0, %v2333_v14  ;;  %v652_v4 = vpop.f32.mrf.mxu1  ;;  %v4016_v32 = vpop.f32.mrf.mxu0 }
 0x27e   : > { %v1747_v26 = vadd.f32 %v1731_v6, %v3679_v38 }
 0x27f   : > { %v2335_v28 = vpop.eup %2334  ;;  %v3981_v36 = vadd.f32 %v1767_v63, %v1744_v43  ;;  %v1729_v45 = vmul.f32 %v1711_v13, %v1688_v48  ;;  %v1730_v31 = vmul.f32 %v1711_v13, %v1689_v25  ;;  %v1772_v9 = vpop.permute.xlu0 %1771  ;;  %2346 = vrcp.f32 %v1863_v15 }
 0x280   : > { %v1862_v53 = vadd.f32 1.0, %v2335_v28  ;;  %v3985_v29 = vadd.f32 %v1767_v63, %v1747_v26  ;;  %2348 = vrcp.f32 %v1860_v56  ;;  %v3992_v27 = vadd.f32 %v1772_v9, %v3753_v11  ;;  %v4245_v56 = vld [vmem:[#allocation9_spill] sm:$0xff]  ;;  %v531_v48 = vpop.f32.mrf.mxu0 }
 0x281   : > { %v2253_v41 = vmul.f32 -1.442695, %v3981_v36  ;;  %v1745_v49 = vadd.f32 %v1729_v45, %v3671_v57  ;;  %v1746_v38 = vadd.f32 %v1730_v31, %v3677_v20  ;;  %v3999_v18 = vadd.f32 %v1772_v9, %v3763_v37 }
 0x282   : > { %v2337_v58 = vpop.eup %2336  ;;  %2350 = vrcp.f32 %v1862_v53  ;;  %v2256_v47 = vmul.f32 -1.442695, %v3985_v29  ;;  %v4002_v46 = vadd.f32 %v1772_v9, %v3765_v52  ;;  %v4006_v1 = vadd.f32 %v1772_v9, %v3757_v33  ;;  %v533_v53 = vpop.f32.mrf.mxu0 }
 0x283   : > { %v2339_v10 = vpop.eup %2338  ;;  %v1856_v0 = vadd.f32 1.0, %v2337_v58  ;;  %2352 = vpow2.f32 %v2253_v41  ;;  %v3996_v17 = vadd.f32 %v1767_v63, %v1746_v38  ;;  %v2257_v37 = vmul.f32 -1.442695, %v3992_v27  ;;  %v4246_v58 = vld [vmem:[#allocation8_spill] sm:$0xff] }
 0x284   : > { %v2341_v57 = vpop.eup %2340  ;;  %v1857_v20 = vadd.f32 1.0, %v2339_v10  ;;  %2354 = vpow2.f32 %v2256_v47  ;;  %v2258_v52 = vmul.f32 -1.442695, %v3999_v18  ;;  %v4012_v59 = vadd.f32 %v1767_v63, %v1745_v49  ;;  %v537_v10 = vpop.f32.mrf.mxu0 }
 0x285   : > { %v2343_v13 = vpop.eup %2342  ;;  %v1858_v11 = vadd.f32 1.0, %v2341_v57  ;;  %2356 = vrcp.f32 %v1856_v0  ;;  %v2255_v50 = vmul.f32 -1.442695, %v3996_v17  ;;  %v2259_v7 = vmul.f32 -1.442695, %v4002_v46 }
 0x286   : > { %v1859_v3 = vadd.f32 1.0, %v2343_v13  ;;  %2358 = vrcp.f32 %v1857_v20  ;;  %v2345_v30 = vpop.eup %2344  ;;  %v2260_v33 = vmul.f32 -1.442695, %v4006_v1  ;;  %v2254_v2 = vmul.f32 -1.442695, %v4012_v59 }
 0x287   : > { %2360 = vrcp.f32 %v1858_v11  ;;  %v1861_v55 = vadd.f32 1.0, %v2345_v30  ;;  %v653_v6 = vadd.f32 %v652_v4, %v4245_v56  ;;  %v651_v26 = vadd.f32 %v650_v35, %v4245_v56 }
 0x288   : > { %2362 = vrcp.f32 %v1859_v3  ;;  %v645_v47 = vadd.f32 %v3983_v12, %v4246_v58 }
 0x289   : > { %2364 = vpow2.f32 %v2255_v50 }
 0x28a   : > { %2366 = vpow2.f32 %v2257_v37 }
 0x28b   : > { %2368 = vpow2.f32 %v2258_v52  ;;  %v539_v52 = vpop.f32.mrf.mxu0 }
 0x28c   : > { %v2347_v14 = vpop.eup %2346  ;;  %2370 = vpow2.f32 %v2259_v7 }
 0x28d   : > { %2372 = vpow2.f32 %v2260_v33  ;;  %v1911_v5 = vmul.f32 %v2347_v14, %v3929_v23  ;;  %v2349_v21 = vpop.eup %2348  ;;  %v534_v14 = vadd.f32 %v533_v53, %v4246_v58 }
 0x28e   : > { %2374 = vrcp.f32 %v1861_v55  ;;  %v1908_v55 = vmul.f32 %v2349_v21, %v3924_v22 }
 0x28f   : > { %v2351_v43 = vpop.eup %2350  ;;  %v1927_v25 = vmul.f32 %v1911_v5, %v653_v6  ;;  %2376 = vpow2.f32 %v2254_v2  ;;  %v540_v6 = vadd.f32 %v539_v52, %v4245_v56  ;;  %v1940_v52 = vpop.permute.xlu1 %1939 }
 0x290   : > { %v2353_v15 = vpop.eup %2352  ;;  %v1910_v63 = vmul.f32 %v2351_v43, %v3934_v42  ;;  %v647_v42 = vadd.f32 %v646_v51, %v4246_v58  ;;  %v532_v43 = vadd.f32 %v531_v48, %v4246_v58 }
 0x291   : > { %v2355_v28 = vpop.eup %2354  ;;  %2050 = vmatprep.subr.mxu1 %v1927_v25  ;;  %v1848_v41 = vadd.f32 1.0, %v2353_v15 }
 0x292   : > { %v2357_v45 = vpop.eup %2356  ;;  %v1926_v31 = vmul.f32 %v1910_v63, %v651_v26  ;;  %v1851_v23 = vadd.f32 1.0, %v2355_v28 }
 0x293   : > { %v2359_v9 = vpop.eup %2358  ;;  %2378 = vrcp.f32 %v1848_v41 }
 0x294   : > { %v2361_v49 = vpop.eup %2360  ;;  %2051 = vmatpush1.msra.mxu1 %v1926_v31  ;;  %2380 = vrcp.f32 %v1851_v23  ;;  %v4247_v31 = vld [vmem:[#allocation7_spill] sm:$0xff] }
 0x295   : > { %v2363_v38 = vpop.eup %2362  ;;  %v1906_v0 = vmul.f32 %v2361_v49, %v3946_v40  ;;  %v1905_v40 = vmul.f32 %v2359_v9, %v3943_v44  ;;  %v538_v44 = vadd.f32 %v537_v10, %v4245_v56  ;;  %v526_v48 = vadd.f32 %v4009_v39, %v4247_v31 }
 0x296   : > { %v2365_v57 = vpop.eup %2364  ;;  %v1907_v20 = vmul.f32 %v2363_v38, %v3949_v60  ;;  %v1904_v60 = vmul.f32 %v2357_v45, %v3940_v61  ;;  %v528_v53 = vadd.f32 %v4016_v32, %v4247_v31  ;;  %v639_v23 = vadd.f32 %v3961_v19, %v4247_v31 }
 0x297   : > { %v2367_v13 = vpop.eup %2366  ;;  %v1850_v11 = vadd.f32 1.0, %v2365_v57  ;;  %v1922_v50 = vmul.f32 %v1906_v0, %v645_v47  ;;  %v1921_v15 = vmul.f32 %v1905_v40, %v534_v14  ;;  %v1924_v26 = vmul.f32 %v1908_v55, %v538_v44  ;;  %v4248_v57 = vld [vmem:[#allocation6_spill] sm:$0xff] }
 0x298   : > { %v2369_v35 = vpop.eup %2368  ;;  %v1852_v3 = vadd.f32 1.0, %v2367_v13  ;;  %v1923_v37 = vmul.f32 %v1907_v20, %v647_v42  ;;  %v1920_v63 = vmul.f32 %v1904_v60, %v532_v43  ;;  %v641_v39 = vadd.f32 %v3969_v24, %v4247_v31 }
 0x299   : > { %v2371_v30 = vpop.eup %2370  ;;  %2382 = vrcp.f32 %v1850_v11  ;;  %v1853_v12 = vadd.f32 1.0, %v2369_v35 }
 0x29a   : > { %v2373_v7 = vpop.eup %2372  ;;  %v1854_v33 = vadd.f32 1.0, %v2371_v30  ;;  %2384 = vrcp.f32 %v1852_v3  ;;  %2052 = vmatprep.subr.mxu1 %v1923_v37 }
 0x29b   : > { %v2375_v51 = vpop.eup %2374  ;;  %v1855_v4 = vadd.f32 1.0, %v2373_v7  ;;  %2386 = vrcp.f32 %v1853_v12  ;;  %2053 = vmatpush1.msra.mxu1 %v1922_v50 }
 0x29c   : > { %v2377_v2 = vpop.eup %2376  ;;  %2388 = vrcp.f32 %v1854_v33  ;;  %v1909_v5 = vmul.f32 %v2375_v51, %v3952_v62 }
 0x29d   : > { %2390 = vrcp.f32 %v1855_v4  ;;  %v1849_v25 = vadd.f32 1.0, %v2377_v2 }
 0x29e   : > { %v1925_v61 = vmul.f32 %v1909_v5, %v540_v6 }
 0x29f   : > { %2392 = vrcp.f32 %v1849_v25 }
 0x2a0   : > { %1973 = vmatprep.subr.mxu0 %v1925_v61  ;;  %v2379_v22 = vpop.eup %2378 }
 0x2a1   : > { %1974 = vmatpush1.msra.mxu0 %v1924_v26  ;;  %v2381_v21 = vpop.eup %2380  ;;  %v1896_v42 = vmul.f32 %v2379_v22, %v3981_v36 }
 0x2a2   : > { %1975 = vmatprep.subr.mxu0 %v1921_v15  ;;  %v1899_v0 = vmul.f32 %v2381_v21, %v3985_v29  ;;  %v520_v29 = vadd.f32 %v3979_v54, %v4248_v57  ;;  %v1929_v54 = vld [vmem:[%s4126_s5 + $0x8] sm:$0xff] }
 0x2a3   : > { %1976 = vmatpush1.msra.mxu0 %v1920_v63 }
 0x2a4   : > { %v1912_v36 = vmul.f32 %v1896_v42, %v520_v29 }
 0x2a6   : > { %v2383_v28 = vpop.eup %2382 }
 0x2a7   : > { %v2385_v45 = vpop.eup %2384  ;;  %v1898_v47 = vmul.f32 %v2383_v28, %v3996_v17  ;;  %v635_v17 = vadd.f32 %v3957_v16, %v4248_v57  ;;  %v4249_v16 = vmov 0.0  }
 0x2a8   : > { %v2387_v62 = vpop.eup %2386  ;;  %v1900_v56 = vmul.f32 %v2385_v45, %v3992_v27 }
 0x2a9   : > { %v2389_v9 = vpop.eup %2388  ;;  %v1901_v41 = vmul.f32 %v2387_v62, %v3999_v18  ;;  %v633_v18 = vadd.f32 %v3936_v34, %v4248_v57  ;;  %v1915_v34 = vmul.f32 %v1899_v0, %v635_v17 }
 0x2aa   : > { %v2391_v49 = vpop.eup %2390  ;;  %v1902_v38 = vmul.f32 %v2389_v9, %v4002_v46  ;;  %v1916_v58 = vmul.f32 %v1900_v56, %v526_v48  ;;  %v522_v46 = vadd.f32 %v3994_v8, %v4248_v57  ;;  %v1928_v8 = vld [vmem:[%s4126_s5] sm:$0xff] }
 0x2ab   : > { %v1917_v10 = vmul.f32 %v1901_v41, %v528_v53  ;;  %v1903_v27 = vmul.f32 %v2391_v49, %v4006_v1  ;;  %v1914_v1 = vmul.f32 %v1898_v47, %v633_v18 }
 0x2ac   : > { %v2393_v32 = vpop.eup %2392  ;;  %v1918_v19 = vmul.f32 %v1902_v38, %v639_v23 }
 0x2ad   : > { %1977 = vmatprep.subr.mxu0 %v1917_v10  ;;  %v1919_v24 = vmul.f32 %v1903_v27, %v641_v39  ;;  %v1897_v20 = vmul.f32 %v2393_v32, %v4012_v59  ;;  %v1935_v59 = vpop.permute.xlu0 %1934 }
 0x2ae   : > { %1978 = vmatpush1.msra.mxu0 %v1916_v58 }
 0x2af   : > { %2054 = vmatprep.subr.mxu1 %v1919_v24  ;;  %v1913_v13 = vmul.f32 %v1897_v20, %v522_v46 }
 0x2b0   : > { %2055 = vmatpush1.msra.mxu1 %v1918_v19 }
 0x2b1   : > { %2056 = vmatprep.subr.mxu1 %v1915_v34  ;;  %1979 = vmatprep.subr.mxu0 %v1913_v13 }
 0x2b2   : > { %2057 = vmatpush1.msra.mxu1 %v1914_v1  ;;  %1980 = vmatpush1.msra.mxu0 %v1912_v36 }
 0x2b3   : > { %2271 = vmatmul.mubr.msk.f32.vlgmr.msra.gmra.mxu1 %vm1942_vm5, %v1928_v8  ;;  %2269 = vmatmul.mubr.msk.f32.vlgmr.msra.gmra.mxu0 %vm1942_vm5, %v1928_v8 }
 0x2b4   : > { %2096 = vmatprep.mubr.f32.mxu1 %v4249_v16  ;;  %2019 = vmatprep.mubr.f32.mxu0 %v4249_v16 }
 0x2b7   : > { %2272 = vmatmul.mubr.msk.f32.gmra.mxu1 %vm1942_vm5, %v1929_v54  ;;  %2270 = vmatmul.mubr.msk.f32.gmra.mxu0 %vm1942_vm5, %v1929_v54 }
 0x373   : > { %v2092_v11 = vpop.f32.mrf.mxu1  ;;  %v2015_v50 = vpop.f32.mrf.mxu0 }
 0x374   : > { %v2093_v35 = vadd.f32 %v2092_v11, %v1935_v59  ;;  %v2016_v3 = vadd.f32 %v2015_v50, %v1935_v59 }
 0x375   : > { %v2094_v37 = vpop.f32.mrf.mxu1  ;;  %v2017_v30 = vpop.f32.mrf.mxu0 }
 0x376   : > { %2105 = vst [vmem:[%s337_s12 + $0x10] sm:$0xff] %v2093_v35  ;;  %2103 = vst [vmem:[%s337_s12] sm:$0xff] %v2016_v3  ;;  %v2095_v12 = vadd.f32 %v2094_v37, %v1935_v59  ;;  %v2018_v7 = vadd.f32 %v2017_v30, %v1935_v59 }
 0x377   : > { %v2098_v33 = vpop.f32.mrf.mxu1  ;;  %v2021_v40 = vpop.f32.mrf.mxu0 }
 0x378   : > { %2106 = vst [vmem:[%s337_s12 + $0x18] sm:$0xff] %v2095_v12  ;;  %2104 = vst [vmem:[%s337_s12 + $0x8] sm:$0xff] %v2018_v7  ;;  %v2099_v51 = vadd.f32 %v2098_v33, %v1940_v52  ;;  %v2022_v60 = vadd.f32 %v2021_v40, %v1940_v52 }
 0x379   : > { %v2100_v4 = vpop.f32.mrf.mxu1  ;;  %v2023_v55 = vpop.f32.mrf.mxu0 }
 0x37a   : > { %2109 = vst [vmem:[%s337_s12 + $0x30] sm:$0xff] %v2099_v51  ;;  %2107 = vst [vmem:[%s337_s12 + $0x20] sm:$0xff] %v2022_v60  ;;  %v2101_v2 = vadd.f32 %v2100_v4, %v1940_v52  ;;  %v2024_v14 = vadd.f32 %v2023_v55, %v1940_v52 }
 0x37c   : > { %2110 = vst [vmem:[%s337_s12 + $0x38] sm:$0xff] %v2101_v2  ;;  %2108 = vst [vmem:[%s337_s12 + $0x28] sm:$0xff] %v2024_v14 }
 0x37d   : > { %2407 = shalt.err (!%p2404_p5)
}
 0x37e   : > { %s2408_s26 = scalar_lea.hbm %s4076_s18, 1024  ;;  %s2412_s12 = scalar_lea.hbm %s4129_s8, 2048 }
 0x37f   : > { %p2409_p7 = scmp.ne.s32.totalorder %s4076_s18, %s2408_s26  ;;  %p2413_p12 = scmp.lt.s32.totalorder %s4076_s18, %s4129_s8 }
 0x380   : > { %p2414_p13 = scmp.lt.s32.totalorder %s2412_s12, %s2408_s26 }
 0x381   : > { %p2410_p10 = pnand %p2409_p7, %p2549_p6 }
 0x382   : > { %p2415_p0 = por %p2414_p13, %p2413_p12 }
 0x383   : > { %p2411_p11 = pneg %p2410_p10 }
 0x385   : > { %p2416_p1 = pnand %p2415_p0, %p2411_p11 }
 0x387   : > { %2419 = shalt.err (!%p2416_p1)
}
 0x388   : > { %s2463_s22 = smov 512   ;;  %s2464_s19 = smov 1024  }
 0x389   : > { %s2465_s21 = smov 32  }
 0x38a   : > { %2280 = dma.vmem_to_hbm [thread:$0]  (%p2549_p6), %s4071_s13, 1024, %s4076_s18, %s4080_s9, %s2463_s22, %s2464_s19, %s2465_s21  }
 0x38b PF: > { %s2140_s20 = sand.u32 1, %s2442_s27   ;;  %p2283_p2 = pnand %p2195_p9, %p2553_p8 }
 0x38c   : > { %s2141_s23 = scalar_lea.sflag [#allocation4], %s2140_s20 }
 0x38d   : > { %p2284_p3 = pneg %p2283_p2 }
 0x38f   : > { %2437 = dma.done.wait (%p2284_p3), %s2141_s23, 1024  }
 0x390   : > { %2439 = vsyncadd (%p2284_p3), %s2141_s23, 4294966272  ;;  %p18_p4 = scmp.ge.s32.totalorder %s2534_s11, 4   ;;  %s4250_s27 = smov %s2446_s28 }
 0x391   : > { %s4251_s28 = smov %s2450_s29  ;;  %s4252_s29 = smov %s2547_s14 }
 0x392   : > { %s4253_s30 = smov %s2534_s11  ;;  %20 = sbr.rel (!%p18_p4) target bundleno = 3 (0x3), region = 126 }
 0x397   :  { %2146 = vsyncpa [#allocation4], 1 }
 0x398   :  { %2148 = vsyncpa [#allocation4 + $0x1], 1 }

</bundles_post_ra>
